<compile_context>
chip_gen: v7x
topology: tpu7x:2x2x1
jax: 0.10.0
libtpu: 0.0.40
codegen_flags: <defaults>
</compile_context>

<pallas_src>
import math

import jax
import jax.numpy as jnp
from jax import lax
from jax.experimental import pallas as pl
from jax.experimental.pallas import tpu as pltpu
from jax.scipy.special import erf as _erf_ref

INV_SQRT2 = 0.7071067811865476
NORM_EPS = 1e-12
VMEM_LIMIT_BYTES = 64 * 1024 * 1024   # <= physical VMEM on v5e/v6e/v7x


# ---------------------------------------------------------------------------
# Elementwise helpers (kernel-safe).
# ---------------------------------------------------------------------------
def _erf_approx(x):
    # Abramowitz & Stegun 7.1.26 rational approximation, |err| <= 1.5e-7.
    # Uses only abs/where/exp/mul/add/div, which all lower on the VPU/EUP.
    # TODO(synk): switch to the native erf primitive if Mosaic grows a lowering.
    a1, a2, a3, a4, a5 = (0.254829592, -0.284496736, 1.421413741,
                          -1.453152027, 1.061405429)
    p = 0.3275911
    ax = jnp.abs(x)
    t = 1.0 / (1.0 + p * ax)
    poly = ((((a5 * t + a4) * t + a3) * t + a2) * t + a1) * t
    e = 1.0 - poly * jnp.exp(-ax * ax)
    return jnp.where(x < 0.0, -e, e)


def _gelu_exact_in_kernel(x):
    # nn.GELU() default == exact (erf-based) GELU; kept in f32.
    return 0.5 * x * (1.0 + _erf_approx(x * INV_SQRT2))


def _rsqrt_norm(x):
    # Matches F.normalize(p=2, dim=-1): x / max(||x||, eps)  (one EUP rsqrt).
    ssq = jnp.sum(x * x, axis=-1, keepdims=True)
    return x * lax.rsqrt(jnp.maximum(ssq, NORM_EPS * NORM_EPS))


# ---------------------------------------------------------------------------
# Stage 1: row-normalize the prototype matrix once (grid-invariant work).
# Emits both the f32 module output and a transposed bf16 copy for the MXU.
# ---------------------------------------------------------------------------
def proto_norm_kernel(v_ref, vn_f32_ref, vnT_bf16_ref):
    vn = _rsqrt_norm(v_ref[...])                     # (tile_out, IN) f32
    vn_f32_ref[...] = vn                             # module output: normed_prototypes
    # (IN, tile_out) layout -> logits stage is a plain (M,K)x(K,N) matmul;
    # the XLU transpose happens exactly once per prototype tile, here.
    vnT_bf16_ref[...] = vn.T.astype(jnp.bfloat16)


# ---------------------------------------------------------------------------
# Stage 2: MLP (Linear-GELU-Linear-GELU-Linear) + L2-normalized x, per batch tile.
# ---------------------------------------------------------------------------
def mlp_kernel(x_ref, w1_ref, b1_ref, w2_ref, b2_ref, w3_ref, b3_ref,
               xproj_ref, xn_ref):
    x = x_ref[...]                                    # (tile_b, IN) f32
    xn_ref[...] = _rsqrt_norm(x).astype(jnp.bfloat16)

    h = jnp.dot(x.astype(jnp.bfloat16), w1_ref[...],
                preferred_element_type=jnp.float32) + b1_ref[...]
    h = _gelu_exact_in_kernel(h)
    h = jnp.dot(h.astype(jnp.bfloat16), w2_ref[...],
                preferred_element_type=jnp.float32) + b2_ref[...]
    h = _gelu_exact_in_kernel(h)
    xproj_ref[...] = jnp.dot(h.astype(jnp.bfloat16), w3_ref[...],
                             preferred_element_type=jnp.float32) + b3_ref[...]


# ---------------------------------------------------------------------------
# Stage 3: logits = normalized(x) @ normalized(prototypes).T, tiled (B, OUT).
# ---------------------------------------------------------------------------
def logits_kernel(xn_ref, vnT_ref, logits_ref):
    logits_ref[...] = jnp.dot(xn_ref[...], vnT_ref[...],
                              preferred_element_type=jnp.float32)


def dino_head_forward(x, w1, b1, w2, b2, w3, b3, proto_v, *,
                      tile_b=512, tile_out=1024):
    B, IN = x.shape
    HID = w1.shape[1]
    BOT = w3.shape[1]
    OUT = proto_v.shape[0]

    tile_b = min(tile_b, B)
    tile_out = min(tile_out, OUT)
    # Keep >= 2 batch tiles when possible so the "parallel" batch axis can be
    # split across both v7x TensorCores (megacore).
    if B // tile_b < 2 and B % 16 == 0:
        tile_b = B // 2
    assert B % tile_b == 0 and OUT % tile_out == 0
    # Lane-dense / (8,128)-tiling assumptions of this kernel.
    assert tile_b % 8 == 0
    assert IN % 128 == 0 and HID % 128 == 0 and BOT % 128 == 0 and tile_out % 128 == 0

    cparams_1d = pltpu.CompilerParams(
        dimension_semantics=("parallel",),
        vmem_limit_bytes=VMEM_LIMIT_BYTES)

    # ---- Stage 1: normalize prototypes once, tiled over OUT. ----
    vn_f32, vnT_bf16 = pl.pallas_call(
        proto_norm_kernel,
        out_shape=(jax.ShapeDtypeStruct((OUT, IN), jnp.float32),
                   jax.ShapeDtypeStruct((IN, OUT), jnp.bfloat16)),
        grid_spec=pltpu.PrefetchScalarGridSpec(
            num_scalar_prefetch=0,
            grid=(OUT // tile_out,),
            in_specs=[pl.BlockSpec((tile_out, IN), lambda j: (j, 0))],
            out_specs=[pl.BlockSpec((tile_out, IN), lambda j: (j, 0)),
                       pl.BlockSpec((IN, tile_out), lambda j: (0, j))],
        ),
        compiler_params=cparams_1d,
    )(proto_v)

    # Cast MLP weights to bf16 once in the wrapper (halves resident VMEM + DMA).
    w1b, w2b, w3b = (w.astype(jnp.bfloat16) for w in (w1, w2, w3))
    invariant = lambda i: (0, 0)

    # ---- Stage 2: MLP + normalized x, tiled over batch only. ----
    x_proj, xn_bf16 = pl.pallas_call(
        mlp_kernel,
        out_shape=(jax.ShapeDtypeStruct((B, BOT), jnp.float32),    # x_proj
                   jax.ShapeDtypeStruct((B, IN), jnp.bfloat16)),   # normalized x
        grid_spec=pltpu.PrefetchScalarGridSpec(
            num_scalar_prefetch=0,
            grid=(B // tile_b,),
            in_specs=[
                pl.BlockSpec((tile_b, IN), lambda i: (i, 0)),      # x
                pl.BlockSpec((IN, HID), invariant),                # w1 (bf16)
                pl.BlockSpec((1, HID), invariant),                 # b1 (f32)
                pl.BlockSpec((HID, HID), invariant),               # w2 (bf16)
                pl.BlockSpec((1, HID), invariant),                 # b2 (f32)
                pl.BlockSpec((HID, BOT), invariant),               # w3 (bf16)
                pl.BlockSpec((1, BOT), invariant),                 # b3 (f32)
            ],
            out_specs=[pl.BlockSpec((tile_b, BOT), lambda i: (i, 0)),
                       pl.BlockSpec((tile_b, IN), lambda i: (i, 0))],
        ),
        compiler_params=cparams_1d,
    )(x, w1b, b1, w2b, b2, w3b, b3)

    # ---- Stage 3: logits matmul; every output block written exactly once. ----
    logits = pl.pallas_call(
        logits_kernel,
        out_shape=jax.ShapeDtypeStruct((B, OUT), jnp.float32),
        grid_spec=pltpu.PrefetchScalarGridSpec(
            num_scalar_prefetch=0,
            grid=(B // tile_b, OUT // tile_out),
            in_specs=[pl.BlockSpec((tile_b, IN), lambda i, j: (i, 0)),     # xn (bf16)
                      pl.BlockSpec((IN, tile_out), lambda i, j: (0, j))],  # protos^T (bf16)
            out_specs=pl.BlockSpec((tile_b, tile_out), lambda i, j: (i, j)),
        ),
        compiler_params=pltpu.CompilerParams(
            dimension_semantics=("parallel", "parallel"),
            vmem_limit_bytes=VMEM_LIMIT_BYTES),
    )(xn_bf16, vnT_bf16)

    return x_proj, logits, vn_f32


# ---------------------------------------------------------------------------
# Pure-JAX reference of the PyTorch forward (weights pre-transposed to (in,out)).
# ---------------------------------------------------------------------------
def _gelu_ref(x):
    return 0.5 * x * (1.0 + _erf_ref(x * INV_SQRT2))


def _l2_normalize_ref(x, eps=NORM_EPS):
    n = jnp.sqrt(jnp.sum(x * x, axis=-1, keepdims=True))
    return x / jnp.maximum(n, eps)


def ref_forward(x, w1, b1, w2, b2, w3, b3, proto_v):
    h = _gelu_ref(x @ w1 + b1)
    h = _gelu_ref(h @ w2 + b2)
    x_proj = h @ w3 + b3
    xn = _l2_normalize_ref(x)
    vn = _l2_normalize_ref(proto_v)
    logits = xn @ vn.T
    return x_proj, logits, vn


def _trunc_normal(key, shape, std=0.02):
    # Mirrors torch.nn.init.trunc_normal_(std=0.02, a=-2, b=2) shape-wise.
    return jax.random.truncated_normal(key, -2.0, 2.0, shape, jnp.float32) * std


if __name__ == "__main__":
    # Small but lane-dense shapes consistent with the module:
    # nlayers=3 MLP (in -> hid -> hid -> bottleneck) + weight-normed prototypes.
    B, IN, HID, BOT, OUT = 256, 256, 512, 256, 512

    key = jax.random.PRNGKey(0)
    kx, k1, k2, k3, kv = jax.random.split(key, 5)

    x = jax.random.normal(kx, (B, IN), jnp.float32)

    # MLP params stored pre-transposed as (in, out); biases init to 0 as in _init_weights.
    w1 = _trunc_normal(k1, (IN, HID))
    b1 = jnp.zeros((1, HID), jnp.float32)
    w2 = _trunc_normal(k2, (HID, HID))
    b2 = jnp.zeros((1, HID), jnp.float32)
    w3 = _trunc_normal(k3, (HID, BOT))
    b3 = jnp.zeros((1, BOT), jnp.float32)

    # prototype_layer.weight_v, PyTorch layout (out_dim, in_dim); weight_g fixed to 1.
    proto_v = jax.random.normal(kv, (OUT, IN), jnp.float32) * (1.0 / math.sqrt(IN))

    x_proj, logits, normed_protos = dino_head_forward(
        x, w1, b1, w2, b2, w3, b3, proto_v)
    jax.block_until_ready((x_proj, logits, normed_protos))

    # Correctness check against a pure-f32 JAX reference of the same math.
    r_proj, r_logits, r_protos = ref_forward(x, w1, b1, w2, b2, w3, b3, proto_v)
    assert jnp.allclose(normed_protos, r_protos, atol=1e-5, rtol=1e-5)
    # Matmuls run with bf16 operands (f32 accumulation) -> bf16-level tolerance.
    assert jnp.allclose(x_proj, r_proj, atol=2e-2, rtol=2e-2)
    assert jnp.allclose(logits, r_logits, atol=2e-2, rtol=2e-2)

    print("KERNEL_OK")
</pallas_src>

<mosaic_0001>
module attributes {stable_mosaic.version = 11 : i64} {
  func.func @proto_norm_kernel(%arg0: i32, %arg1: memref<512x256xf32, #tpu.memory_space<vmem>>, %arg2: memref<512x256xf32, #tpu.memory_space<vmem>>, %arg3: memref<256x512xbf16, #tpu.memory_space<vmem>>) attributes {dimension_semantics = [#tpu.dimension_semantics<parallel>], iteration_bounds = array<i64: 1>, scalar_prefetch = 0 : i64, scratch_operands = 0 : i64, tpu.core_type = #tpu.core_type<tc>, window_params = [{transform_indices = @transform_0, window_bounds = array<i64: 512, 256>}, {transform_indices = @transform_1, window_bounds = array<i64: 512, 256>}, {transform_indices = @transform_2, window_bounds = array<i64: 256, 512>}]} {
    %c0 = arith.constant 0 : index
    %c0_0 = arith.constant 0 : index
    %0 = vector.load %arg1[%c0, %c0_0] : memref<512x256xf32, #tpu.memory_space<vmem>>, vector<512x256xf32>
    %1 = arith.mulf %0, %0 : vector<512x256xf32>
    %cst = arith.constant dense<0.000000e+00> : vector<512xf32>
    %2 = vector.multi_reduction <add>, %1, %cst [1] : vector<512x256xf32> to vector<512xf32>
    %3 = vector.shape_cast %2 : vector<512xf32> to vector<512x1xf32>
    %cst_1 = arith.constant 1.000000e-24 : f32
    %4 = vector.broadcast %cst_1 : f32 to vector<512x1xf32>
    %5 = arith.maximumf %3, %4 : vector<512x1xf32>
    %6 = math.rsqrt %5 : vector<512x1xf32>
    %7 = vector.broadcast %6 : vector<512x1xf32> to vector<512x256xf32>
    %8 = arith.mulf %0, %7 : vector<512x256xf32>
    %c0_2 = arith.constant 0 : index
    %c0_3 = arith.constant 0 : index
    %9 = vector.load %arg2[%c0_2, %c0_3] : memref<512x256xf32, #tpu.memory_space<vmem>>, vector<512x256xf32>
    tpu.vector_store %arg2[%c0_2, %c0_3], %8 {strides = array<i32>} : memref<512x256xf32, #tpu.memory_space<vmem>>, vector<512x256xf32>,
    %10 = tpu.transpose %8, [1, 0] : vector<512x256xf32> -> vector<256x512xf32>
    %11 = arith.truncf %10 : vector<256x512xf32> to vector<256x512xbf16>
    %c0_4 = arith.constant 0 : index
    %c0_5 = arith.constant 0 : index
    %12 = vector.load %arg3[%c0_4, %c0_5] : memref<256x512xbf16, #tpu.memory_space<vmem>>, vector<256x512xbf16>
    tpu.vector_store %arg3[%c0_4, %c0_5], %11 {strides = array<i32>} : memref<256x512xbf16, #tpu.memory_space<vmem>>, vector<256x512xbf16>,
    return
  }
  func.func @transform_0(%arg0: i32) -> (i32, i32) {
    %c0_i32 = arith.constant 0 : i32
    %c0_i32_0 = arith.constant 0 : i32
    return %arg0, %c0_i32 : i32, i32
  }
  func.func @transform_1(%arg0: i32) -> (i32, i32) {
    %c0_i32 = arith.constant 0 : i32
    %c0_i32_0 = arith.constant 0 : i32
    return %arg0, %c0_i32 : i32, i32
  }
  func.func @transform_2(%arg0: i32) -> (i32, i32) {
    %c0_i32 = arith.constant 0 : i32
    %c0_i32_0 = arith.constant 0 : i32
    return %c0_i32, %arg0 : i32, i32
  }
}

</mosaic_0001>

<bundles_post_ra>
// kernel: tpu_custom_call.1
= control target key start
LH: loop header
LB: loop body
LE: loop exit
PB: predicated region body
PF: predicated region fallthrough
CT: control target
= control target key end

     0   :  { %8 = vsyncpa [#allocation3], 0  ;;  %s3277_s0 = inlined_call_operand.hbm [shape: f32[512,256], index: 0, kind: input, shape index: {}]   ;;  %s3278_s1 = inlined_call_operand.hbm [shape: f32[512,256], index: 1, kind: output, shape index: {0}]   ;;  %s3279_s2 = inlined_call_operand.hbm [shape: bf16[256,512], index: 2, kind: output, shape index: {1}]  }
   0x1   :  { %9 = vsyncpa [#allocation4], 0 }
   0x2   :  { %10 = vsyncpa [#allocation7], 0  ;;  %s2444_s9 = smov [#allocation2]   ;;  %s2372_s13 = scalar_lea.hbm %s3277_s0, 16384 }
   0x3   :  { %s16_s10 = sshll.u32 %s2444_s9, 4  ;;  %p2373_p0 = scmp.ne.s32.totalorder %s3277_s0, %s2372_s13  ;;  %s17_s10 = int_to_ptr.vmem [resolvable:$true] %s16_s10 }
   0x4   :  { %p2376_p1 = scmp.lt.u32.totalorder %s2372_s13, %s3277_s0 }
   0x6   :  { %p2378_p2 = pnand %p2376_p1, %p2373_p0 }
   0x8   :  { %2381 = shalt.err (!%p2378_p2)
}
   0x9   :  { %s2382_s18 = scalar_lea.vmem %s17_s10, 16384  ;;  %p2387_p4 = scmp.lt.s32.totalorder %s17_s10, %s17_s10 }
   0xa   :  { %p2383_p3 = scmp.ne.s32.totalorder %s17_s10, %s2382_s18  ;;  %p2388_p5 = scmp.lt.s32.totalorder %s2382_s18, %s2382_s18 }
   0xc   :  { %p2389_p6 = por %p2388_p5, %p2387_p4 }
   0xe   :  { %p2390_p7 = pnand %p2389_p6, %p2383_p3 }
  0x10   :  { %2393 = shalt.err (!%p2390_p7)
}
  0x11   :  { %s2445_s19 = smov 256   ;;  %s2446_s20 = smov 16  }
  0x12   :  { %22 = dma.hbm_to_vmem [thread:$0]  %s3277_s0, 16384, %s17_s10, [#allocation3], %s2445_s19, %s2445_s19, %s2446_s20  }
  0x13   :  { %2438 = dma.done.wait [#allocation3], 16384  }
  0x14   :  { %2439 = vsyncadd [#allocation3], 4294950912  ;;  %v2479_v0 = vld [vmem:[#allocation2] sm:$0xff]  ;;  %v2481_v1 = vld [vmem:[#allocation2 + $0x8] sm:$0xff]  ;;  %s2447_s0 = smov [#allocation5]  }
  0x15   :  { %v2483_v2 = vld [vmem:[#allocation2 + $0x20] sm:$0xff]  ;;  %v154_v3 = vmul.f32 %v2479_v0, %v2479_v0  ;;  %v155_v4 = vmul.f32 %v2481_v1, %v2481_v1  ;;  %v2489_v5 = vld [vmem:[#allocation2 + $0x28] sm:$0xff]  ;;  %v2493_v7 = vld [vmem:[#allocation2 + $0x10] sm:$0xff]  ;;  %s1567_s23 = sshll.u32 %s2447_s0, 4  ;;  %s1568_s23 = int_to_ptr.vmem [resolvable:$true] %s1567_s23 }
  0x16   :  { %v158_v6 = vmul.f32 %v2483_v2, %v2483_v2  ;;  %v2495_v8 = vld [vmem:[#allocation2 + $0x18] sm:$0xff]  ;;  %v159_v9 = vmul.f32 %v2489_v5, %v2489_v5  ;;  %v156_v10 = vmul.f32 %v2493_v7, %v2493_v7  ;;  %v2503_v12 = vld [vmem:[#allocation2 + $0x30] sm:$0xff]  ;;  %v2507_v14 = vld [vmem:[#allocation2 + $0x40] sm:$0xff]  ;;  %s2394_s24 = scalar_lea.vmem %s1568_s23, 16384  ;;  %p2399_p9 = scmp.lt.s32.totalorder %s1568_s23, %s1568_s23 }
  0x17   :  { %v157_v11 = vmul.f32 %v2495_v8, %v2495_v8  ;;  %v2505_v13 = vld [vmem:[#allocation2 + $0x38] sm:$0xff]  ;;  %v282_v15 = vadd.f32 %v155_v4, %v154_v3  ;;  %v160_v16 = vmul.f32 %v2503_v12, %v2503_v12  ;;  %v2513_v18 = vld [vmem:[#allocation2 + $0x48] sm:$0xff]  ;;  %v2515_v19 = vld [vmem:[#allocation2 + $0x50] sm:$0xff]  ;;  %v162_v23 = vmul.f32 %v2507_v14, %v2507_v14  ;;  %p2395_p8 = scmp.ne.s32.totalorder %s1568_s23, %s2394_s24  ;;  %p2400_p10 = scmp.lt.s32.totalorder %s2394_s24, %s2394_s24 }
  0x18   :  { %v161_v17 = vmul.f32 %v2505_v13, %v2505_v13  ;;  %v2517_v20 = vld [vmem:[#allocation2 + $0x58] sm:$0xff]  ;;  %v288_v21 = vadd.f32 %v159_v9, %v158_v6  ;;  %v163_v24 = vmul.f32 %v2513_v18, %v2513_v18  ;;  %v164_v26 = vmul.f32 %v2515_v19, %v2515_v19  ;;  %v2527_v28 = vld [vmem:[#allocation2 + $0x60] sm:$0xff]  ;;  %v2529_v29 = vld [vmem:[#allocation2 + $0x68] sm:$0xff] }
  0x19   :  { %283 = vadd.xlane.f32.xlu0 %v282_v15  ;;  %v285_v22 = vadd.f32 %v157_v11, %v156_v10  ;;  %v165_v27 = vmul.f32 %v2517_v20, %v2517_v20  ;;  %v2531_v30 = vld [vmem:[#allocation2 + $0x70] sm:$0xff]  ;;  %v2533_v31 = vld [vmem:[#allocation2 + $0x78] sm:$0xff]  ;;  %v166_v33 = vmul.f32 %v2527_v28, %v2527_v28  ;;  %v167_v34 = vmul.f32 %v2529_v29, %v2529_v29  ;;  %v2543_v38 = vld [vmem:[#allocation2 + $0x80] sm:$0xff]  ;;  %p2401_p11 = por %p2400_p10, %p2399_p9 }
  0x1a   :  { %289 = vadd.xlane.f32.xlu1 %v288_v21  ;;  %v291_v25 = vadd.f32 %v161_v17, %v160_v16  ;;  %v294_v32 = vadd.f32 %v163_v24, %v162_v23  ;;  %v168_v36 = vmul.f32 %v2531_v30, %v2531_v30  ;;  %v169_v37 = vmul.f32 %v2533_v31, %v2533_v31  ;;  %v2545_v39 = vld [vmem:[#allocation2 + $0x88] sm:$0xff]  ;;  %v2547_v40 = vld [vmem:[#allocation2 + $0x90] sm:$0xff]  ;;  %v2549_v41 = vld [vmem:[#allocation2 + $0x98] sm:$0xff] }
  0x1b   :  { %v297_v35 = vadd.f32 %v165_v27, %v164_v26  ;;  %v300_v42 = vadd.f32 %v167_v34, %v166_v33  ;;  %v170_v43 = vmul.f32 %v2543_v38, %v2543_v38  ;;  %v171_v44 = vmul.f32 %v2545_v39, %v2545_v39  ;;  %v2559_v48 = vld [vmem:[#allocation2 + $0xa0] sm:$0xff]  ;;  %v2561_v49 = vld [vmem:[#allocation2 + $0xa8] sm:$0xff]  ;;  %v2563_v50 = vld [vmem:[#allocation2 + $0xb0] sm:$0xff]  ;;  %p2402_p12 = pnand %p2401_p11, %p2395_p8 }
  0x1c   :  { %v303_v45 = vadd.f32 %v169_v37, %v168_v36  ;;  %v172_v46 = vmul.f32 %v2547_v40, %v2547_v40  ;;  %v173_v47 = vmul.f32 %v2549_v41, %v2549_v41  ;;  %v2565_v51 = vld [vmem:[#allocation2 + $0xb8] sm:$0xff]  ;;  %v174_v53 = vmul.f32 %v2559_v48, %v2559_v48  ;;  %v2575_v58 = vld [vmem:[#allocation2 + $0xc0] sm:$0xff]  ;;  %v2577_v59 = vld [vmem:[#allocation2 + $0xc8] sm:$0xff] }
  0x1d   :  { %286 = vadd.xlane.f32.xlu0 %v285_v22  ;;  %v306_v52 = vadd.f32 %v171_v44, %v170_v43  ;;  %v175_v54 = vmul.f32 %v2561_v49, %v2561_v49  ;;  %v176_v56 = vmul.f32 %v2563_v50, %v2563_v50  ;;  %v177_v57 = vmul.f32 %v2565_v51, %v2565_v51  ;;  %v2579_v60 = vld [vmem:[#allocation2 + $0xd0] sm:$0xff]  ;;  %v2581_v61 = vld [vmem:[#allocation2 + $0xd8] sm:$0xff]  ;;  %v2591_v10 = vld [vmem:[#allocation2 + $0xe0] sm:$0xff] }
  0x1e   :  { %292 = vadd.xlane.f32.xlu1 %v291_v25  ;;  %v309_v55 = vadd.f32 %v173_v47, %v172_v46  ;;  %v178_v63 = vmul.f32 %v2575_v58, %v2575_v58  ;;  %v179_v3 = vmul.f32 %v2577_v59, %v2577_v59  ;;  %v180_v6 = vmul.f32 %v2579_v60, %v2579_v60  ;;  %v2593_v11 = vld [vmem:[#allocation2 + $0xe8] sm:$0xff]  ;;  %v2595_v15 = vld [vmem:[#allocation2 + $0xf0] sm:$0xff]  ;;  %v2597_v16 = vld [vmem:[#allocation2 + $0xf8] sm:$0xff] }
  0x1f   :  { %v312_v62 = vadd.f32 %v175_v54, %v174_v53  ;;  %v315_v4 = vadd.f32 %v177_v57, %v176_v56  ;;  %v181_v9 = vmul.f32 %v2581_v61, %v2581_v61  ;;  %v182_v21 = vmul.f32 %v2591_v10, %v2591_v10  ;;  %v2607_v26 = vld [vmem:[#allocation2 + $0x100] sm:$0xff]  ;;  %v2609_v27 = vld [vmem:[#allocation2 + $0x108] sm:$0xff]  ;;  %v2613_v33 = vld [vmem:[#allocation2 + $0x118] sm:$0xff] }
  0x20   :  { %v318_v17 = vadd.f32 %v179_v3, %v178_v63  ;;  %v183_v22 = vmul.f32 %v2593_v11, %v2593_v11  ;;  %v184_v24 = vmul.f32 %v2595_v15, %v2595_v15  ;;  %v185_v25 = vmul.f32 %v2597_v16, %v2597_v16  ;;  %v2623_v44 = vld [vmem:[#allocation2 + $0x120] sm:$0xff]  ;;  %v2627_v46 = vld [vmem:[#allocation2 + $0x130] sm:$0xff]  ;;  %v2629_v47 = vld [vmem:[#allocation2 + $0x138] sm:$0xff] }
  0x21   :  { %295 = vadd.xlane.f32.xlu0 %v294_v32  ;;  %v321_v23 = vadd.f32 %v181_v9, %v180_v6  ;;  %v2611_v32 = vld [vmem:[#allocation2 + $0x110] sm:$0xff]  ;;  %v187_v36 = vmul.f32 %v2609_v27, %v2609_v27  ;;  %v189_v43 = vmul.f32 %v2613_v33, %v2613_v33  ;;  %3302 = vst [vmem:[#allocation11_spill] sm:$0xff] %v2627_v46  ;;  %3303 = vst [vmem:[#allocation12_spill] sm:$0xff] %v2629_v47  ;;  %v2641_v63 = vld [vmem:[#allocation2 + $0x148] sm:$0xff] }
  0x22   :  { %298 = vadd.xlane.f32.xlu1 %v297_v35  ;;  %v324_v34 = vadd.f32 %v183_v22, %v182_v21  ;;  %v186_v35 = vmul.f32 %v2607_v26, %v2607_v26  ;;  %v327_v37 = vadd.f32 %v185_v25, %v184_v24  ;;  %v190_v53 = vmul.f32 %v2623_v44, %v2623_v44  ;;  %v2643_v3 = vld [vmem:[#allocation2 + $0x150] sm:$0xff]  ;;  %v2655_v24 = vld [vmem:[#allocation2 + $0x160] sm:$0xff]  ;;  %v2657_v25 = vld [vmem:[#allocation2 + $0x168] sm:$0xff] }
  0x23   :  { %v192_v56 = vmul.f32 %v2627_v46, %v2627_v46  ;;  %v193_v57 = vmul.f32 %v2629_v47, %v2629_v47  ;;  %3305 = vst [vmem:[#allocation14_spill] sm:$0xff] %v2641_v63  ;;  %3306 = vst [vmem:[#allocation15_spill] sm:$0xff] %v2643_v3  ;;  %v196_v22 = vmul.f32 %v2643_v3, %v2643_v3  ;;  %v93_v3 = vld [vmem:[#allocation2 + $0x218] sm:$0xff] }
  0x24   :  { %3308 = vst [vmem:[#allocation17_spill] sm:$0xff] %v2655_v24  ;;  %3309 = vst [vmem:[#allocation18_spill] sm:$0xff] %v2657_v25  ;;  %v221_v46 = vmul.f32 %v93_v3, %v93_v3 }
  0x25   :  { %301 = vadd.xlane.f32.xlu0 %v300_v42  ;;  %v188_v42 = vmul.f32 %v2611_v32, %v2611_v32  ;;  %v339_v21 = vadd.f32 %v193_v57, %v192_v56  ;;  %v2675_v56 = vld [vmem:[#allocation2 + $0x190] sm:$0xff]  ;;  %v2677_v57 = vld [vmem:[#allocation2 + $0x198] sm:$0xff] }
  0x26   :  { %304 = vadd.xlane.f32.xlu1 %v303_v45  ;;  %v2625_v45 = vld [vmem:[#allocation2 + $0x128] sm:$0xff]  ;;  %3314 = vst [vmem:[#allocation23_spill] sm:$0xff] %v2675_v56  ;;  %3315 = vst [vmem:[#allocation24_spill] sm:$0xff] %v2677_v57 }
  0x27   :  { %v191_v54 = vmul.f32 %v2625_v45, %v2625_v45 }
  0x29   :  { %307 = vadd.xlane.f32.xlu0 %v306_v52  ;;  %v330_v52 = vadd.f32 %v187_v36, %v186_v35  ;;  %v336_v6 = vadd.f32 %v191_v54, %v190_v53  ;;  %v2661_v35 = vld [vmem:[#allocation2 + $0x178] sm:$0xff]  ;;  %v2671_v54 = vld [vmem:[#allocation2 + $0x180] sm:$0xff] }
  0x2a   :  { %310 = vadd.xlane.f32.xlu1 %v309_v55  ;;  %v333_v55 = vadd.f32 %v189_v43, %v188_v42  ;;  %3311 = vst [vmem:[#allocation20_spill] sm:$0xff] %v2661_v35  ;;  %v199_v42 = vmul.f32 %v2657_v25, %v2657_v25  ;;  %v201_v53 = vmul.f32 %v2661_v35, %v2661_v35  ;;  %3312 = vst [vmem:[#allocation21_spill] sm:$0xff] %v2671_v54  ;;  %v2687_v35 = vld [vmem:[#allocation2 + $0x1a0] sm:$0xff]  ;;  %v88_v25 = vld [vmem:[#allocation2 + $0x1f0] sm:$0xff] }
  0x2b   :  { %3316 = vst [vmem:[#allocation25_spill] sm:$0xff] %v2687_v35 }
  0x2d   :  { %313 = vadd.xlane.f32.xlu0 %v312_v62  ;;  %v2639_v62 = vld [vmem:[#allocation2 + $0x140] sm:$0xff] }
  0x2e   :  { %316 = vadd.xlane.f32.xlu1 %v315_v4  ;;  %3304 = vst [vmem:[#allocation13_spill] sm:$0xff] %v2639_v62  ;;  %v2645_v4 = vld [vmem:[#allocation2 + $0x158] sm:$0xff]  ;;  %v194_v9 = vmul.f32 %v2639_v62, %v2639_v62 }
  0x2f   :  { %3307 = vst [vmem:[#allocation16_spill] sm:$0xff] %v2645_v4 }
  0x31   :  { %319 = vadd.xlane.f32.xlu0 %v318_v17  ;;  %v195_v17 = vmul.f32 %v2641_v63, %v2641_v63 }
  0x32   :  { %322 = vadd.xlane.f32.xlu1 %v321_v23  ;;  %v197_v23 = vmul.f32 %v2645_v4, %v2645_v4  ;;  %v216_v4 = vmul.f32 %v88_v25, %v88_v25 }
  0x33   :  { %v342_v36 = vadd.f32 %v195_v17, %v194_v9  ;;  %v202_v9 = vmul.f32 %v2671_v54, %v2671_v54  ;;  %v2705_v54 = vld [vmem:[#allocation2 + $0x1c8] sm:$0xff] }
  0x34   :  { %v345_v43 = vadd.f32 %v197_v23, %v196_v22  ;;  %v204_v22 = vmul.f32 %v2675_v56, %v2675_v56  ;;  %v205_v23 = vmul.f32 %v2677_v57, %v2677_v57  ;;  %3321 = vst [vmem:[#allocation30_spill] sm:$0xff] %v2705_v54 }
  0x35   :  { %325 = vadd.xlane.f32.xlu0 %v324_v34  ;;  %v2659_v34 = vld [vmem:[#allocation2 + $0x170] sm:$0xff] }
  0x36   :  { %328 = vadd.xlane.f32.xlu1 %v327_v37  ;;  %3310 = vst [vmem:[#allocation19_spill] sm:$0xff] %v2659_v34  ;;  %v198_v37 = vmul.f32 %v2655_v24, %v2655_v24  ;;  %v89_v24 = vld [vmem:[#allocation2 + $0x1f8] sm:$0xff] }
  0x39   :  { %331 = vadd.xlane.f32.xlu0 %v330_v52  ;;  %v200_v52 = vmul.f32 %v2659_v34, %v2659_v34  ;;  %v2689_v34 = vld [vmem:[#allocation2 + $0x1a8] sm:$0xff] }
  0x3a   :  { %334 = vadd.xlane.f32.xlu1 %v333_v55  ;;  %v2673_v55 = vld [vmem:[#allocation2 + $0x188] sm:$0xff]  ;;  %3317 = vst [vmem:[#allocation26_spill] sm:$0xff] %v2689_v34 }
  0x3b   :  { %3313 = vst [vmem:[#allocation22_spill] sm:$0xff] %v2673_v55  ;;  %v203_v17 = vmul.f32 %v2673_v55, %v2673_v55  ;;  %v2703_v55 = vld [vmem:[#allocation2 + $0x1c0] sm:$0xff] }
  0x3c   :  { %3320 = vst [vmem:[#allocation29_spill] sm:$0xff] %v2703_v55 }
  0x3d   :  { %337 = vadd.xlane.f32.xlu0 %v336_v6  ;;  %v348_v6 = vadd.f32 %v199_v42, %v198_v37  ;;  %v2693_v37 = vld [vmem:[#allocation2 + $0x1b8] sm:$0xff]  ;;  %v354_v42 = vadd.f32 %v203_v17, %v202_v9 }
  0x3e   :  { %340 = vadd.xlane.f32.xlu1 %v339_v21  ;;  %v351_v21 = vadd.f32 %v201_v53, %v200_v52  ;;  %3319 = vst [vmem:[#allocation28_spill] sm:$0xff] %v2693_v37  ;;  %v207_v52 = vmul.f32 %v2689_v34, %v2689_v34  ;;  %v357_v53 = vadd.f32 %v205_v23, %v204_v22  ;;  %v2709_v9 = vld [vmem:[#allocation2 + $0x1d8] sm:$0xff]  ;;  %v86_v34 = vld [vmem:[#allocation2 + $0x1e0] sm:$0xff] }
  0x3f   :  { %v209_v56 = vmul.f32 %v2693_v37, %v2693_v37  ;;  %3323 = vst [vmem:[#allocation32_spill] sm:$0xff] %v2709_v9  ;;  %v211_v22 = vmul.f32 %v2705_v54, %v2705_v54  ;;  %v217_v54 = vmul.f32 %v89_v24, %v89_v24 }
  0x41   :  { %343 = vadd.xlane.f32.xlu0 %v342_v36  ;;  %v2691_v36 = vld [vmem:[#allocation2 + $0x1b0] sm:$0xff]  ;;  %v375_v62 = vadd.f32 %v217_v54, %v216_v4 }
  0x42   :  { %346 = vadd.xlane.f32.xlu1 %v345_v43  ;;  %3318 = vst [vmem:[#allocation27_spill] sm:$0xff] %v2691_v36  ;;  %v206_v43 = vmul.f32 %v2687_v35, %v2687_v35  ;;  %v208_v57 = vmul.f32 %v2691_v36, %v2691_v36  ;;  %v213_v36 = vmul.f32 %v2709_v9, %v2709_v9  ;;  %v87_v35 = vld [vmem:[#allocation2 + $0x1e8] sm:$0xff] }
  0x44   :  { %v360_v17 = vadd.f32 %v207_v52, %v206_v43  ;;  %v363_v23 = vadd.f32 %v209_v56, %v208_v57  ;;  %v214_v43 = vmul.f32 %v86_v34, %v86_v34  ;;  %v215_v52 = vmul.f32 %v87_v35, %v87_v35  ;;  %v91_v56 = vld [vmem:[#allocation2 + $0x208] sm:$0xff]  ;;  %v92_v57 = vld [vmem:[#allocation2 + $0x210] sm:$0xff]  ;;  %v97_v35 = vld [vmem:[#allocation2 + $0x238] sm:$0xff] }
  0x45   :  { %349 = vadd.xlane.f32.xlu0 %v348_v6  ;;  %v2707_v6 = vld [vmem:[#allocation2 + $0x1d0] sm:$0xff]  ;;  %v219_v9 = vmul.f32 %v91_v56, %v91_v56  ;;  %v220_v47 = vmul.f32 %v92_v57, %v92_v57 }
  0x46   :  { %352 = vadd.xlane.f32.xlu1 %v351_v21  ;;  %3322 = vst [vmem:[#allocation31_spill] sm:$0xff] %v2707_v6  ;;  %v210_v21 = vmul.f32 %v2703_v55, %v2703_v55  ;;  %v212_v37 = vmul.f32 %v2707_v6, %v2707_v6  ;;  %v372_v6 = vadd.f32 %v215_v52, %v214_v43  ;;  %v96_v34 = vld [vmem:[#allocation2 + $0x230] sm:$0xff]  ;;  %v99_v43 = vld [vmem:[#allocation2 + $0x248] sm:$0xff] }
  0x47   :  { %v100_v52 = vld [vmem:[#allocation2 + $0x250] sm:$0xff]  ;;  %v227_v3 = vmul.f32 %v99_v43, %v99_v43 }
  0x48   :  { %v369_v55 = vadd.f32 %v213_v36, %v212_v37  ;;  %v381_v37 = vadd.f32 %v221_v46, %v220_v47  ;;  %v228_v56 = vmul.f32 %v100_v52, %v100_v52 }
  0x49   :  { %355 = vadd.xlane.f32.xlu0 %v354_v42  ;;  %v366_v42 = vadd.f32 %v211_v22, %v210_v21  ;;  %v95_v21 = vld [vmem:[#allocation2 + $0x228] sm:$0xff]  ;;  %v224_v22 = vmul.f32 %v96_v34, %v96_v34 }
  0x4a   :  { %358 = vadd.xlane.f32.xlu1 %v357_v53  ;;  %v90_v53 = vld [vmem:[#allocation2 + $0x200] sm:$0xff]  ;;  %v223_v24 = vmul.f32 %v95_v21, %v95_v21 }
  0x4b   :  { %v218_v63 = vmul.f32 %v90_v53, %v90_v53  ;;  %v101_v53 = vld [vmem:[#allocation2 + $0x258] sm:$0xff] }
  0x4c   :  { %v229_v57 = vmul.f32 %v101_v53, %v101_v53 }
  0x4d   :  { %361 = vadd.xlane.f32.xlu0 %v360_v17  ;;  %v94_v17 = vld [vmem:[#allocation2 + $0x220] sm:$0xff]  ;;  %v378_v36 = vadd.f32 %v219_v9, %v218_v63  ;;  %v103_v63 = vld [vmem:[#allocation2 + $0x268] sm:$0xff]  ;;  %v104_v9 = vld [vmem:[#allocation2 + $0x270] sm:$0xff] }
  0x4e   :  { %364 = vadd.xlane.f32.xlu1 %v363_v23  ;;  %v222_v25 = vmul.f32 %v94_v17, %v94_v17  ;;  %v225_v23 = vmul.f32 %v97_v35, %v97_v35  ;;  %v105_v17 = vld [vmem:[#allocation2 + $0x278] sm:$0xff]  ;;  %v393_v21 = vadd.f32 %v229_v57, %v228_v56  ;;  %v232_v34 = vmul.f32 %v104_v9, %v104_v9 }
  0x4f   :  { %v233_v35 = vmul.f32 %v105_v17, %v105_v17 }
  0x50   :  { %v384_v4 = vadd.f32 %v223_v24, %v222_v25  ;;  %v107_v25 = vld [vmem:[#allocation2 + $0x288] sm:$0xff]  ;;  %v108_v24 = vld [vmem:[#allocation2 + $0x290] sm:$0xff] }
  0x51   :  { %367 = vadd.xlane.f32.xlu0 %v366_v42  ;;  %v98_v42 = vld [vmem:[#allocation2 + $0x240] sm:$0xff]  ;;  %v399_v43 = vadd.f32 %v233_v35, %v232_v34  ;;  %v236_v52 = vmul.f32 %v108_v24, %v108_v24 }
  0x52   :  { %370 = vadd.xlane.f32.xlu1 %v369_v55  ;;  %v226_v54 = vmul.f32 %v98_v42, %v98_v42  ;;  %v387_v55 = vadd.f32 %v225_v23, %v224_v22  ;;  %v109_v42 = vld [vmem:[#allocation2 + $0x298] sm:$0xff]  ;;  %v235_v23 = vmul.f32 %v107_v25, %v107_v25 }
  0x53   :  { %v237_v53 = vmul.f32 %v109_v42, %v109_v42 }
  0x54   :  { %v390_v46 = vadd.f32 %v227_v3, %v226_v54  ;;  %v111_v54 = vld [vmem:[#allocation2 + $0x2a8] sm:$0xff]  ;;  %v112_v3 = vld [vmem:[#allocation2 + $0x2b0] sm:$0xff] }
  0x55   :  { %373 = vadd.xlane.f32.xlu0 %v372_v6  ;;  %v102_v6 = vld [vmem:[#allocation2 + $0x260] sm:$0xff]  ;;  %v239_v57 = vmul.f32 %v111_v54, %v111_v54  ;;  %v240_v9 = vmul.f32 %v112_v3, %v112_v3 }
  0x56   :  { %376 = vadd.xlane.f32.xlu1 %v375_v62  ;;  %v230_v47 = vmul.f32 %v102_v6, %v102_v6  ;;  %v231_v62 = vmul.f32 %v103_v63, %v103_v63  ;;  %v113_v6 = vld [vmem:[#allocation2 + $0x2b8] sm:$0xff]  ;;  %v405_v63 = vadd.f32 %v237_v53, %v236_v52 }
  0x57   :  { %v241_v17 = vmul.f32 %v113_v6, %v113_v6 }
  0x59   :  { %379 = vadd.xlane.f32.xlu0 %v378_v36  ;;  %v106_v36 = vld [vmem:[#allocation2 + $0x280] sm:$0xff]  ;;  %v411_v25 = vadd.f32 %v241_v17, %v240_v9 }
  0x5a   :  { %382 = vadd.xlane.f32.xlu1 %v381_v37  ;;  %v396_v37 = vadd.f32 %v231_v62, %v230_v47  ;;  %v234_v22 = vmul.f32 %v106_v36, %v106_v36  ;;  %v115_v47 = vld [vmem:[#allocation2 + $0x2c8] sm:$0xff]  ;;  %v116_v62 = vld [vmem:[#allocation2 + $0x2d0] sm:$0xff]  ;;  %v117_v36 = vld [vmem:[#allocation2 + $0x2d8] sm:$0xff] }
  0x5b   :  { %v243_v35 = vmul.f32 %v115_v47, %v115_v47  ;;  %v244_v24 = vmul.f32 %v116_v62, %v116_v62  ;;  %v245_v42 = vmul.f32 %v117_v36, %v117_v36 }
  0x5d   :  { %385 = vadd.xlane.f32.xlu0 %v384_v4  ;;  %v110_v4 = vld [vmem:[#allocation2 + $0x2a0] sm:$0xff]  ;;  %v417_v54 = vadd.f32 %v245_v42, %v244_v24 }
  0x5e   :  { %388 = vadd.xlane.f32.xlu1 %v387_v55  ;;  %v402_v55 = vadd.f32 %v235_v23, %v234_v22  ;;  %v238_v56 = vmul.f32 %v110_v4, %v110_v4  ;;  %v119_v22 = vld [vmem:[#allocation2 + $0x2e8] sm:$0xff]  ;;  %v120_v23 = vld [vmem:[#allocation2 + $0x2f0] sm:$0xff]  ;;  %v121_v4 = vld [vmem:[#allocation2 + $0x2f8] sm:$0xff] }
  0x5f   :  { %v247_v53 = vmul.f32 %v119_v22, %v119_v22  ;;  %v248_v3 = vmul.f32 %v120_v23, %v120_v23  ;;  %v249_v6 = vmul.f32 %v121_v4, %v121_v4  ;;  %v130_v23 = vld [vmem:[#allocation2 + $0x340] sm:$0xff]  ;;  %v131_v4 = vld [vmem:[#allocation2 + $0x348] sm:$0xff] }
  0x61   :  { %391 = vadd.xlane.f32.xlu0 %v390_v46  ;;  %v114_v46 = vld [vmem:[#allocation2 + $0x2c0] sm:$0xff]  ;;  %v423_v47 = vadd.f32 %v249_v6, %v248_v3  ;;  %v258_v3 = vmul.f32 %v130_v23, %v130_v23  ;;  %v259_v6 = vmul.f32 %v131_v4, %v131_v4  ;;  %v141_v23 = vld [vmem:[#allocation2 + $0x398] sm:$0xff] }
  0x62   :  { %394 = vadd.xlane.f32.xlu1 %v393_v21  ;;  %v408_v21 = vadd.f32 %v239_v57, %v238_v56  ;;  %v242_v34 = vmul.f32 %v114_v46, %v114_v46  ;;  %v123_v56 = vld [vmem:[#allocation2 + $0x308] sm:$0xff]  ;;  %v124_v57 = vld [vmem:[#allocation2 + $0x310] sm:$0xff]  ;;  %v125_v46 = vld [vmem:[#allocation2 + $0x318] sm:$0xff] }
  0x63   :  { %v251_v17 = vmul.f32 %v123_v56, %v123_v56  ;;  %v252_v62 = vmul.f32 %v124_v57, %v124_v57  ;;  %v253_v36 = vmul.f32 %v125_v46, %v125_v46  ;;  %v134_v57 = vld [vmem:[#allocation2 + $0x360] sm:$0xff]  ;;  %v135_v46 = vld [vmem:[#allocation2 + $0x368] sm:$0xff] }
  0x65   :  { %397 = vadd.xlane.f32.xlu0 %v396_v37  ;;  %v118_v37 = vld [vmem:[#allocation2 + $0x2e0] sm:$0xff]  ;;  %v429_v22 = vadd.f32 %v253_v36, %v252_v62  ;;  %v262_v62 = vmul.f32 %v134_v57, %v134_v57  ;;  %v263_v36 = vmul.f32 %v135_v46, %v135_v46  ;;  %v145_v57 = vld [vmem:[#allocation2 + $0x3b8] sm:$0xff] }
  0x66   :  { %400 = vadd.xlane.f32.xlu1 %v399_v43  ;;  %v414_v43 = vadd.f32 %v243_v35, %v242_v34  ;;  %v246_v52 = vmul.f32 %v118_v37, %v118_v37  ;;  %v127_v34 = vld [vmem:[#allocation2 + $0x328] sm:$0xff]  ;;  %v128_v35 = vld [vmem:[#allocation2 + $0x330] sm:$0xff]  ;;  %v129_v37 = vld [vmem:[#allocation2 + $0x338] sm:$0xff] }
  0x67   :  { %v255_v42 = vmul.f32 %v127_v34, %v127_v34  ;;  %v138_v34 = vld [vmem:[#allocation2 + $0x380] sm:$0xff] }
  0x68   :  { %v266_v4 = vmul.f32 %v138_v34, %v138_v34  ;;  %v149_v34 = vld [vmem:[#allocation2 + $0x3d8] sm:$0xff] }
  0x69   :  { %403 = vadd.xlane.f32.xlu0 %v402_v55  ;;  %v122_v55 = vld [vmem:[#allocation2 + $0x300] sm:$0xff] }
  0x6a   :  { %406 = vadd.xlane.f32.xlu1 %v405_v63  ;;  %v420_v63 = vadd.f32 %v247_v53, %v246_v52  ;;  %v250_v9 = vmul.f32 %v122_v55, %v122_v55  ;;  %v257_v52 = vmul.f32 %v129_v37, %v129_v37  ;;  %v132_v53 = vld [vmem:[#allocation2 + $0x350] sm:$0xff]  ;;  %v133_v55 = vld [vmem:[#allocation2 + $0x358] sm:$0xff] }
  0x6d   :  { %409 = vadd.xlane.f32.xlu0 %v408_v21  ;;  %v126_v21 = vld [vmem:[#allocation2 + $0x320] sm:$0xff] }
  0x6e   :  { %412 = vadd.xlane.f32.xlu1 %v411_v25  ;;  %v426_v25 = vadd.f32 %v251_v17, %v250_v9  ;;  %v254_v24 = vmul.f32 %v126_v21, %v126_v21  ;;  %v261_v9 = vmul.f32 %v133_v55, %v133_v55  ;;  %v136_v17 = vld [vmem:[#allocation2 + $0x370] sm:$0xff]  ;;  %v137_v21 = vld [vmem:[#allocation2 + $0x378] sm:$0xff] }
  0x71   :  { %415 = vadd.xlane.f32.xlu0 %v414_v43  ;;  %v256_v43 = vmul.f32 %v128_v35, %v128_v35  ;;  %v139_v35 = vld [vmem:[#allocation2 + $0x388] sm:$0xff] }
  0x72   :  { %418 = vadd.xlane.f32.xlu1 %v417_v54  ;;  %v432_v54 = vadd.f32 %v255_v42, %v254_v24  ;;  %v265_v24 = vmul.f32 %v137_v21, %v137_v21  ;;  %v140_v42 = vld [vmem:[#allocation2 + $0x390] sm:$0xff] }
  0x73   :  { %v435_v56 = vadd.f32 %v257_v52, %v256_v43  ;;  %v267_v43 = vmul.f32 %v139_v35, %v139_v35  ;;  %v142_v52 = vld [vmem:[#allocation2 + $0x3a0] sm:$0xff] }
  0x74   :  { %v270_v46 = vmul.f32 %v142_v52, %v142_v52  ;;  %v153_v52 = vld [vmem:[#allocation2 + $0x3f8] sm:$0xff] }
  0x75   :  { %421 = vadd.xlane.f32.xlu0 %v420_v63  ;;  %v260_v63 = vmul.f32 %v132_v53, %v132_v53  ;;  %v143_v53 = vld [vmem:[#allocation2 + $0x3a8] sm:$0xff] }
  0x76   :  { %424 = vadd.xlane.f32.xlu1 %v423_v47  ;;  %v438_v47 = vadd.f32 %v259_v6, %v258_v3  ;;  %v269_v3 = vmul.f32 %v141_v23, %v141_v23  ;;  %v144_v6 = vld [vmem:[#allocation2 + $0x3b0] sm:$0xff] }
  0x77   :  { %v441_v37 = vadd.f32 %v261_v9, %v260_v63  ;;  %v271_v63 = vmul.f32 %v143_v53, %v143_v53  ;;  %v146_v9 = vld [vmem:[#allocation2 + $0x3c0] sm:$0xff] }
  0x79   :  { %427 = vadd.xlane.f32.xlu0 %v426_v25  ;;  %v264_v25 = vmul.f32 %v136_v17, %v136_v17  ;;  %v147_v17 = vld [vmem:[#allocation2 + $0x3c8] sm:$0xff]  ;;  %v456_v35 = vadd.f32 %v271_v63, %v270_v46 }
  0x7a   :  { %430 = vadd.xlane.f32.xlu1 %v429_v22  ;;  %v444_v22 = vadd.f32 %v263_v36, %v262_v62  ;;  %v273_v62 = vmul.f32 %v145_v57, %v145_v57  ;;  %v148_v36 = vld [vmem:[#allocation2 + $0x3d0] sm:$0xff]  ;;  %v281_v57 = vmul.f32 %v153_v52, %v153_v52 }
  0x7b   :  { %v447_v55 = vadd.f32 %v265_v24, %v264_v25  ;;  %v275_v25 = vmul.f32 %v147_v17, %v147_v17  ;;  %v150_v24 = vld [vmem:[#allocation2 + $0x3e0] sm:$0xff] }
  0x7d   :  { %433 = vadd.xlane.f32.xlu0 %v432_v54  ;;  %v268_v54 = vmul.f32 %v140_v42, %v140_v42  ;;  %v151_v42 = vld [vmem:[#allocation2 + $0x3e8] sm:$0xff] }
  0x7e   :  { %436 = vadd.xlane.f32.xlu1 %v435_v56  ;;  %v450_v56 = vadd.f32 %v267_v43, %v266_v4  ;;  %v277_v4 = vmul.f32 %v149_v34, %v149_v34  ;;  %v152_v43 = vld [vmem:[#allocation2 + $0x3f0] sm:$0xff] }
  0x7f   :  { %v453_v21 = vadd.f32 %v269_v3, %v268_v54  ;;  %v279_v54 = vmul.f32 %v151_v42, %v151_v42 }
  0x81   :  { %439 = vadd.xlane.f32.xlu0 %v438_v47  ;;  %v272_v47 = vmul.f32 %v144_v6, %v144_v6  ;;  %v280_v6 = vmul.f32 %v152_v43, %v152_v43 }
  0x82   :  { %442 = vadd.xlane.f32.xlu1 %v441_v37  ;;  %v274_v37 = vmul.f32 %v146_v9, %v146_v9 }
  0x83   :  { %v459_v23 = vadd.f32 %v273_v62, %v272_v47  ;;  %v471_v46 = vadd.f32 %v281_v57, %v280_v6 }
  0x84   :  { %v462_v53 = vadd.f32 %v275_v25, %v274_v37 }
  0x85   :  { %445 = vadd.xlane.f32.xlu0 %v444_v22  ;;  %v276_v22 = vmul.f32 %v148_v36, %v148_v36 }
  0x86   :  { %448 = vadd.xlane.f32.xlu1 %v447_v55  ;;  %v278_v55 = vmul.f32 %v150_v24, %v150_v24 }
  0x87   :  { %v465_v3 = vadd.f32 %v277_v4, %v276_v22 }
  0x89   :  { %451 = vadd.xlane.f32.xlu0 %v450_v56  ;;  %v468_v56 = vadd.f32 %v279_v54, %v278_v55 }
  0x8a   :  { %454 = vadd.xlane.f32.xlu1 %v453_v21 }
  0x8d   :  { %457 = vadd.xlane.f32.xlu0 %v456_v35 }
  0x8e   :  { %460 = vadd.xlane.f32.xlu1 %v459_v23 }
  0x91   :  { %463 = vadd.xlane.f32.xlu0 %v462_v53 }
  0x92   :  { %466 = vadd.xlane.f32.xlu1 %v465_v3 }
  0x95   :  { %469 = vadd.xlane.f32.xlu0 %v468_v56 }
  0x96   :  { %472 = vadd.xlane.f32.xlu1 %v471_v46 }
  0xa6   :  { %v284_v63 = vpop.xlane.xlu0 %283 }
  0xa7   :  { %v474_v9 = vmax.f32 %v284_v63, 1e-24  ;;  %v290_v17 = vpop.xlane.xlu1 %289 }
  0xa8   :  { %v476_v21 = vmax.f32 %v290_v17, 1e-24 }
  0xa9   :  { %2176 = vrsqrt.f32 %v474_v9 }
  0xaa   :  { %2178 = vrsqrt.f32 %v476_v21  ;;  %v287_v47 = vpop.xlane.xlu0 %286 }
  0xab   :  { %v475_v62 = vmax.f32 %v287_v47, 1e-24  ;;  %v293_v36 = vpop.xlane.xlu1 %292 }
  0xac   :  { %v477_v34 = vmax.f32 %v293_v36, 1e-24 }
  0xad   :  { %2180 = vrsqrt.f32 %v475_v62 }
  0xae   :  { %2182 = vrsqrt.f32 %v477_v34  ;;  %v296_v35 = vpop.xlane.xlu0 %295 }
  0xaf   :  { %v478_v37 = vmax.f32 %v296_v35, 1e-24  ;;  %v299_v25 = vpop.xlane.xlu1 %298 }
  0xb0   :  { %v479_v24 = vmax.f32 %v299_v25, 1e-24 }
  0xb1   :  { %2184 = vrsqrt.f32 %v478_v37 }
  0xb2   :  { %2186 = vrsqrt.f32 %v479_v24  ;;  %v302_v42 = vpop.xlane.xlu0 %301 }
  0xb3   :  { %v2177_v23 = vpop.eup %2176  ;;  %v480_v22 = vmax.f32 %v302_v42, 1e-24  ;;  %v305_v4 = vpop.xlane.xlu1 %304 }
  0xb4   :  { %v2179_v43 = vpop.eup %2178  ;;  %v481_v52 = vmax.f32 %v305_v4, 1e-24  ;;  %v602_v53 = vmul.f32 %v2177_v23, %v2479_v0  ;;  %v603_v55 = vmul.f32 %v2177_v23, %v2481_v1 }
  0xb5   :  { %2188 = vrsqrt.f32 %v480_v22  ;;  %v2722_v54 = vmul.f32 %v2179_v43, %v2483_v2  ;;  %v2725_v3 = vmul.f32 %v2179_v43, %v2489_v5 }
  0xb6   :  { %2190 = vrsqrt.f32 %v481_v52  ;;  %v308_v6 = vpop.xlane.xlu0 %307  ;;  %731 = vst [vmem:[#allocation5 + $0x8] sm:$0xff] %v603_v55  ;;  %730 = vst [vmem:[#allocation5] sm:$0xff] %v602_v53 }
  0xb7   :  { %v2181_v57 = vpop.eup %2180  ;;  %v482_v56 = vmax.f32 %v308_v6, 1e-24  ;;  %v311_v46 = vpop.xlane.xlu1 %310  ;;  %735 = vst [vmem:[#allocation5 + $0x28] sm:$0xff] %v2725_v3  ;;  %734 = vst [vmem:[#allocation5 + $0x20] sm:$0xff] %v2722_v54 }
  0xb8   :  { %v2183_v0 = vpop.eup %2182  ;;  %v483_v1 = vmax.f32 %v311_v46, 1e-24  ;;  %v604_v63 = vmul.f32 %v2181_v57, %v2493_v7  ;;  %v605_v2 = vmul.f32 %v2181_v57, %v2495_v8 }
  0xb9   :  { %2192 = vrsqrt.f32 %v482_v56  ;;  %v2732_v5 = vmul.f32 %v2183_v0, %v2503_v12  ;;  %v2735_v9 = vmul.f32 %v2183_v0, %v2505_v13 }
  0xba   :  { %2194 = vrsqrt.f32 %v483_v1  ;;  %v314_v17 = vpop.xlane.xlu0 %313  ;;  %733 = vst [vmem:[#allocation5 + $0x18] sm:$0xff] %v605_v2  ;;  %732 = vst [vmem:[#allocation5 + $0x10] sm:$0xff] %v604_v63 }
  0xbb   :  { %v2185_v21 = vpop.eup %2184  ;;  %v484_v47 = vmax.f32 %v314_v17, 1e-24  ;;  %v317_v62 = vpop.xlane.xlu1 %316  ;;  %737 = vst [vmem:[#allocation5 + $0x38] sm:$0xff] %v2735_v9  ;;  %736 = vst [vmem:[#allocation5 + $0x30] sm:$0xff] %v2732_v5 }
  0xbc   :  { %v2187_v7 = vpop.eup %2186  ;;  %v485_v8 = vmax.f32 %v317_v62, 1e-24  ;;  %v2740_v36 = vmul.f32 %v2185_v21, %v2507_v14  ;;  %v2743_v12 = vmul.f32 %v2185_v21, %v2513_v18 }
  0xbd   :  { %2196 = vrsqrt.f32 %v484_v47  ;;  %v2746_v13 = vmul.f32 %v2187_v7, %v2515_v19  ;;  %v2749_v34 = vmul.f32 %v2187_v7, %v2517_v20  ;;  %v1728_v19 = vpack.i.bf16 %v603_v55, %v602_v53 }
  0xbe   :  { %2198 = vrsqrt.f32 %v485_v8  ;;  %v320_v35 = vpop.xlane.xlu0 %319  ;;  %739 = vst [vmem:[#allocation5 + $0x48] sm:$0xff] %v2743_v12  ;;  %738 = vst [vmem:[#allocation5 + $0x40] sm:$0xff] %v2740_v36  ;;  %v1730_v53 = vpack.i.bf16 %v605_v2, %v604_v63 }
  0xbf   :  { %v2189_v37 = vpop.eup %2188  ;;  %v486_v25 = vmax.f32 %v320_v35, 1e-24  ;;  %v323_v14 = vpop.xlane.xlu1 %322  ;;  %741 = vst [vmem:[#allocation5 + $0x58] sm:$0xff] %v2749_v34  ;;  %740 = vst [vmem:[#allocation5 + $0x50] sm:$0xff] %v2746_v13 }
  0xc0   :  { %v2191_v18 = vpop.eup %2190  ;;  %v487_v24 = vmax.f32 %v323_v14, 1e-24  ;;  %v2756_v42 = vmul.f32 %v2189_v37, %v2527_v28  ;;  %v2759_v20 = vmul.f32 %v2189_v37, %v2529_v29 }
  0xc1   :  { %2200 = vrsqrt.f32 %v486_v25  ;;  %v2762_v23 = vmul.f32 %v2191_v18, %v2531_v30  ;;  %v2765_v22 = vmul.f32 %v2191_v18, %v2533_v31 }
  0xc2   :  { %2202 = vrsqrt.f32 %v487_v24  ;;  %1729 = vxpose.xlu0.b32.start [1/16] %v1728_v19, 128  ;;  %v326_v4 = vpop.xlane.xlu0 %325  ;;  %743 = vst [vmem:[#allocation5 + $0x68] sm:$0xff] %v2759_v20  ;;  %742 = vst [vmem:[#allocation5 + $0x60] sm:$0xff] %v2756_v42 }
  0xc3   :  { %v2193_v43 = vpop.eup %2192  ;;  %v488_v28 = vmax.f32 %v326_v4, 1e-24  ;;  %v329_v52 = vpop.xlane.xlu1 %328  ;;  %745 = vst [vmem:[#allocation5 + $0x78] sm:$0xff] %v2765_v22  ;;  %744 = vst [vmem:[#allocation5 + $0x70] sm:$0xff] %v2762_v23 }
  0xc4   :  { %v2195_v29 = vpop.eup %2194  ;;  %v489_v30 = vmax.f32 %v329_v52, 1e-24  ;;  %v2772_v31 = vmul.f32 %v2193_v43, %v2543_v38  ;;  %v2775_v55 = vmul.f32 %v2193_v43, %v2545_v39 }
  0xc5   :  { %2204 = vrsqrt.f32 %v488_v28  ;;  %v2778_v6 = vmul.f32 %v2195_v29, %v2547_v40  ;;  %v2781_v57 = vmul.f32 %v2195_v29, %v2549_v41  ;;  %v1732_v41 = vpack.i.bf16 %v2725_v3, %v2722_v54 }
  0xc6   :  { %2206 = vrsqrt.f32 %v489_v30  ;;  %1731 = vxpose.xlu0.b32.cont [2/16] %v1730_v53, 128  ;;  %v332_v56 = vpop.xlane.xlu0 %331  ;;  %747 = vst [vmem:[#allocation5 + $0x88] sm:$0xff] %v2775_v55  ;;  %746 = vst [vmem:[#allocation5 + $0x80] sm:$0xff] %v2772_v31 }
  0xc7   :  { %v2197_v46 = vpop.eup %2196  ;;  %v490_v38 = vmax.f32 %v332_v56, 1e-24  ;;  %v335_v0 = vpop.xlane.xlu1 %334  ;;  %749 = vst [vmem:[#allocation5 + $0x98] sm:$0xff] %v2781_v57  ;;  %748 = vst [vmem:[#allocation5 + $0x90] sm:$0xff] %v2778_v6 }
  0xc8   :  { %v2199_v39 = vpop.eup %2198  ;;  %v491_v40 = vmax.f32 %v335_v0, 1e-24  ;;  %v2790_v1 = vmul.f32 %v2197_v46, %v2559_v48  ;;  %v2793_v63 = vmul.f32 %v2197_v46, %v2561_v49  ;;  %v3324_v46 = vld [vmem:[#allocation11_spill] sm:$0xff]  ;;  %v3325_v0 = vld [vmem:[#allocation12_spill] sm:$0xff] }
  0xc9   :  { %2208 = vrsqrt.f32 %v490_v38  ;;  %v2796_v2 = vmul.f32 %v2199_v39, %v2563_v50  ;;  %v2799_v17 = vmul.f32 %v2199_v39, %v2565_v51  ;;  %v1734_v51 = vpack.i.bf16 %v2735_v9, %v2732_v5 }
  0xca   :  { %2210 = vrsqrt.f32 %v491_v40  ;;  %1733 = vxpose.xlu0.b32.cont [3/16] %v1732_v41, 128  ;;  %v338_v21 = vpop.xlane.xlu0 %337  ;;  %751 = vst [vmem:[#allocation5 + $0xa8] sm:$0xff] %v2793_v63  ;;  %750 = vst [vmem:[#allocation5 + $0xa0] sm:$0xff] %v2790_v1 }
  0xcb   :  { %v2201_v54 = vpop.eup %2200  ;;  %v492_v48 = vmax.f32 %v338_v21, 1e-24  ;;  %v341_v3 = vpop.xlane.xlu1 %340  ;;  %753 = vst [vmem:[#allocation5 + $0xb8] sm:$0xff] %v2799_v17  ;;  %752 = vst [vmem:[#allocation5 + $0xb0] sm:$0xff] %v2796_v2 }
  0xcc   :  { %v2203_v49 = vpop.eup %2202  ;;  %v493_v50 = vmax.f32 %v341_v3, 1e-24  ;;  %v2808_v47 = vmul.f32 %v2201_v54, %v2575_v58  ;;  %v2811_v62 = vmul.f32 %v2201_v54, %v2577_v59  ;;  %v3326_v54 = vld [vmem:[#allocation13_spill] sm:$0xff]  ;;  %v3327_v3 = vld [vmem:[#allocation14_spill] sm:$0xff] }
  0xcd   :  { %2212 = vrsqrt.f32 %v492_v48  ;;  %v2814_v7 = vmul.f32 %v2203_v49, %v2579_v60  ;;  %v2817_v8 = vmul.f32 %v2203_v49, %v2581_v61  ;;  %v1736_v61 = vpack.i.bf16 %v2743_v12, %v2740_v36 }
  0xce   :  { %2214 = vrsqrt.f32 %v493_v50  ;;  %1735 = vxpose.xlu0.b32.cont [4/16] %v1734_v51, 128  ;;  %v344_v35 = vpop.xlane.xlu0 %343  ;;  %755 = vst [vmem:[#allocation5 + $0xc8] sm:$0xff] %v2811_v62  ;;  %754 = vst [vmem:[#allocation5 + $0xc0] sm:$0xff] %v2808_v47  ;;  %v3328_v50 = vld [vmem:[#allocation15_spill] sm:$0xff] }
  0xcf   :  { %v2205_v5 = vpop.eup %2204  ;;  %v494_v58 = vmax.f32 %v344_v35, 1e-24  ;;  %v347_v9 = vpop.xlane.xlu1 %346  ;;  %757 = vst [vmem:[#allocation5 + $0xd8] sm:$0xff] %v2817_v8  ;;  %756 = vst [vmem:[#allocation5 + $0xd0] sm:$0xff] %v2814_v7  ;;  %v3329_v35 = vld [vmem:[#allocation16_spill] sm:$0xff] }
  0xd0   :  { %v2207_v59 = vpop.eup %2206  ;;  %v495_v60 = vmax.f32 %v347_v9, 1e-24  ;;  %v2826_v37 = vmul.f32 %v2205_v5, %v2591_v10  ;;  %v2829_v25 = vmul.f32 %v2205_v5, %v2593_v11 }
  0xd1   :  { %2216 = vrsqrt.f32 %v494_v58  ;;  %v2832_v14 = vmul.f32 %v2207_v59, %v2595_v15  ;;  %v2835_v18 = vmul.f32 %v2207_v59, %v2597_v16  ;;  %v1738_v16 = vpack.i.bf16 %v2749_v34, %v2746_v13 }
  0xd2   :  { %2218 = vrsqrt.f32 %v495_v60  ;;  %1737 = vxpose.xlu0.b32.cont [5/16] %v1736_v61, 128  ;;  %v350_v24 = vpop.xlane.xlu0 %349  ;;  %759 = vst [vmem:[#allocation5 + $0xe8] sm:$0xff] %v2829_v25  ;;  %758 = vst [vmem:[#allocation5 + $0xe0] sm:$0xff] %v2826_v37  ;;  %v1740_v13 = vpack.i.bf16 %v2759_v20, %v2756_v42 }
  0xd3   :  { %v2209_v36 = vpop.eup %2208  ;;  %v496_v10 = vmax.f32 %v350_v24, 1e-24  ;;  %v353_v12 = vpop.xlane.xlu1 %352  ;;  %761 = vst [vmem:[#allocation5 + $0xf8] sm:$0xff] %v2835_v18  ;;  %760 = vst [vmem:[#allocation5 + $0xf0] sm:$0xff] %v2832_v14  ;;  %v1744_v24 = vpack.i.bf16 %v2775_v55, %v2772_v31 }
  0xd4   :  { %v2211_v11 = vpop.eup %2210  ;;  %v497_v15 = vmax.f32 %v353_v12, 1e-24  ;;  %v634_v19 = vmul.f32 %v2209_v36, %v2607_v26  ;;  %v635_v4 = vmul.f32 %v2209_v36, %v2609_v27  ;;  %v3330_v36 = vld [vmem:[#allocation17_spill] sm:$0xff]  ;;  %v3331_v12 = vld [vmem:[#allocation18_spill] sm:$0xff] }
  0xd5   :  { %2220 = vrsqrt.f32 %v496_v10  ;;  %v636_v43 = vmul.f32 %v2211_v11, %v2611_v32  ;;  %v637_v28 = vmul.f32 %v2211_v11, %v2613_v33 }
  0xd6   :  { %2222 = vrsqrt.f32 %v497_v15  ;;  %1739 = vxpose.xlu0.b32.cont [6/16] %v1738_v16, 128  ;;  %v356_v52 = vpop.xlane.xlu0 %355  ;;  %763 = vst [vmem:[#allocation5 + $0x108] sm:$0xff] %v635_v4  ;;  %v1840_v29 = vpack.i.bf16 %v635_v4, %v634_v19  ;;  %762 = vst [vmem:[#allocation5 + $0x100] sm:$0xff] %v634_v19  ;;  %v3332_v15 = vld [vmem:[#allocation19_spill] sm:$0xff]  ;;  %v3333_v19 = vld [vmem:[#allocation20_spill] sm:$0xff] }
  0xd7   :  { %v2213_v30 = vpop.eup %2212  ;;  %v498_v53 = vmax.f32 %v356_v52, 1e-24  ;;  %v359_v56 = vpop.xlane.xlu1 %358  ;;  %765 = vst [vmem:[#allocation5 + $0x118] sm:$0xff] %v637_v28  ;;  %764 = vst [vmem:[#allocation5 + $0x110] sm:$0xff] %v636_v43  ;;  %v1842_v32 = vpack.i.bf16 %v637_v28, %v636_v43 }
  0xd8   :  { %v2215_v26 = vpop.eup %2214  ;;  %1841 = vxpose.xlu1.b32.start [1/16] %v1840_v29, 128  ;;  %v499_v27 = vmax.f32 %v359_v56, 1e-24  ;;  %v638_v33 = vmul.f32 %v2213_v30, %v2623_v44  ;;  %v639_v34 = vmul.f32 %v2213_v30, %v2625_v45  ;;  %v1742_v45 = vpack.i.bf16 %v2765_v22, %v2762_v23  ;;  %v3334_v56 = vld [vmem:[#allocation21_spill] sm:$0xff] }
  0xd9   :  { %2224 = vrsqrt.f32 %v498_v53  ;;  %v640_v38 = vmul.f32 %v2215_v26, %v3324_v46  ;;  %v641_v39 = vmul.f32 %v2215_v26, %v3325_v0  ;;  %v1746_v53 = vpack.i.bf16 %v2781_v57, %v2778_v6  ;;  %v3335_v26 = vld [vmem:[#allocation22_spill] sm:$0xff] }
  0xda   :  { %2226 = vrsqrt.f32 %v499_v27  ;;  %1741 = vxpose.xlu0.b32.cont [7/16] %v1740_v13, 128  ;;  %v362_v40 = vpop.xlane.xlu0 %361  ;;  %767 = vst [vmem:[#allocation5 + $0x128] sm:$0xff] %v639_v34  ;;  %766 = vst [vmem:[#allocation5 + $0x120] sm:$0xff] %v638_v33  ;;  %v1844_v9 = vpack.i.bf16 %v639_v34, %v638_v33  ;;  %v3337_v34 = vld [vmem:[#allocation24_spill] sm:$0xff] }
  0xdb   :  { %v2217_v42 = vpop.eup %2216  ;;  %v500_v20 = vmax.f32 %v362_v40, 1e-24  ;;  %v365_v41 = vpop.xlane.xlu1 %364  ;;  %769 = vst [vmem:[#allocation5 + $0x138] sm:$0xff] %v641_v39  ;;  %768 = vst [vmem:[#allocation5 + $0x130] sm:$0xff] %v640_v38  ;;  %v1846_v28 = vpack.i.bf16 %v641_v39, %v640_v38 }
  0xdc   :  { %v2219_v21 = vpop.eup %2218  ;;  %1843 = vxpose.xlu1.b32.cont [2/16] %v1842_v32, 128  ;;  %v501_v44 = vmax.f32 %v365_v41, 1e-24  ;;  %v642_v48 = vmul.f32 %v2217_v42, %v3326_v54  ;;  %v643_v49 = vmul.f32 %v2217_v42, %v3327_v3  ;;  %v3336_v32 = vld [vmem:[#allocation23_spill] sm:$0xff]  ;;  %v3338_v41 = vld [vmem:[#allocation25_spill] sm:$0xff]  ;;  %v3341_v3 = vld [vmem:[#allocation28_spill] sm:$0xff] }
  0xdd   :  { %2228 = vrsqrt.f32 %v500_v20  ;;  %v2858_v51 = vmul.f32 %v2219_v21, %v3328_v50  ;;  %v2861_v5 = vmul.f32 %v2219_v21, %v3329_v35  ;;  %v1748_v20 = vpack.i.bf16 %v2793_v63, %v2790_v1  ;;  %v3340_v54 = vld [vmem:[#allocation27_spill] sm:$0xff] }
  0xde   :  { %2230 = vrsqrt.f32 %v501_v44  ;;  %1743 = vxpose.xlu0.b32.cont [8/16] %v1742_v45, 128  ;;  %v368_v58 = vpop.xlane.xlu0 %367  ;;  %771 = vst [vmem:[#allocation5 + $0x148] sm:$0xff] %v643_v49  ;;  %770 = vst [vmem:[#allocation5 + $0x140] sm:$0xff] %v642_v48  ;;  %v1848_v0 = vpack.i.bf16 %v643_v49, %v642_v48  ;;  %v3339_v44 = vld [vmem:[#allocation26_spill] sm:$0xff] }
  0xdf   :  { %v2221_v59 = vpop.eup %2220  ;;  %v502_v60 = vmax.f32 %v368_v58, 1e-24  ;;  %v371_v23 = vpop.xlane.xlu1 %370  ;;  %773 = vst [vmem:[#allocation5 + $0x158] sm:$0xff] %v2861_v5  ;;  %772 = vst [vmem:[#allocation5 + $0x150] sm:$0xff] %v2858_v51  ;;  %v1850_v35 = vpack.i.bf16 %v2861_v5, %v2858_v51  ;;  %v3343_v51 = vld [vmem:[#allocation30_spill] sm:$0xff] }
  0xe0   :  { %v2223_v22 = vpop.eup %2222  ;;  %1845 = vxpose.xlu1.b32.cont [3/16] %v1844_v9, 128  ;;  %v503_v61 = vmax.f32 %v371_v23, 1e-24  ;;  %v2868_v10 = vmul.f32 %v2221_v59, %v3330_v36  ;;  %v2871_v11 = vmul.f32 %v2221_v59, %v3331_v12  ;;  %v3342_v23 = vld [vmem:[#allocation29_spill] sm:$0xff]  ;;  %v3345_v36 = vld [vmem:[#allocation32_spill] sm:$0xff] }
  0xe1   :  { %2232 = vrsqrt.f32 %v502_v60  ;;  %v2874_v16 = vmul.f32 %v2223_v22, %v3332_v15  ;;  %v2877_v4 = vmul.f32 %v2223_v22, %v3333_v19  ;;  %v1750_v60 = vpack.i.bf16 %v2799_v17, %v2796_v2 }
  0xe2   :  { %2234 = vrsqrt.f32 %v503_v61  ;;  %1745 = vxpose.xlu0.b32.cont [9/16] %v1744_v24, 128  ;;  %v374_v43 = vpop.xlane.xlu0 %373  ;;  %775 = vst [vmem:[#allocation5 + $0x168] sm:$0xff] %v2871_v11  ;;  %774 = vst [vmem:[#allocation5 + $0x160] sm:$0xff] %v2868_v10  ;;  %v3344_v61 = vld [vmem:[#allocation31_spill] sm:$0xff]  ;;  %v1852_v19 = vpack.i.bf16 %v2871_v11, %v2868_v10  ;;  %v2305_v10 = vld [vmem:[#allocation2 + $0x1e8] sm:$0xff] }
  0xe3   :  { %v2225_v31 = vpop.eup %2224  ;;  %v504_v55 = vmax.f32 %v374_v43, 1e-24  ;;  %v377_v52 = vpop.xlane.xlu1 %376  ;;  %777 = vst [vmem:[#allocation5 + $0x178] sm:$0xff] %v2877_v4  ;;  %776 = vst [vmem:[#allocation5 + $0x170] sm:$0xff] %v2874_v16 }
  0xe4   :  { %v2227_v29 = vpop.eup %2226  ;;  %1847 = vxpose.xlu1.b32.cont [4/16] %v1846_v28, 128  ;;  %v505_v30 = vmax.f32 %v377_v52, 1e-24  ;;  %v2886_v13 = vmul.f32 %v2225_v31, %v3334_v56  ;;  %v2889_v27 = vmul.f32 %v2225_v31, %v3335_v26  ;;  %v2304_v52 = vld [vmem:[#allocation2 + $0x1e0] sm:$0xff]  ;;  %v2307_v56 = vld [vmem:[#allocation2 + $0x1f8] sm:$0xff] }
  0xe5   :  { %2236 = vrsqrt.f32 %v504_v55  ;;  %v2892_v33 = vmul.f32 %v2227_v29, %v3336_v32  ;;  %v2895_v46 = vmul.f32 %v2227_v29, %v3337_v34  ;;  %v1752_v55 = vpack.i.bf16 %v2811_v62, %v2808_v47 }
  0xe6   :  { %2238 = vrsqrt.f32 %v505_v30  ;;  %1747 = vxpose.xlu0.b32.cont [10/16] %v1746_v53, 128  ;;  %v380_v38 = vpop.xlane.xlu0 %379  ;;  %779 = vst [vmem:[#allocation5 + $0x188] sm:$0xff] %v2889_v27  ;;  %778 = vst [vmem:[#allocation5 + $0x180] sm:$0xff] %v2886_v13  ;;  %v2306_v30 = vld [vmem:[#allocation2 + $0x1f0] sm:$0xff]  ;;  %v1854_v34 = vpack.i.bf16 %v2877_v4, %v2874_v16  ;;  %v2309_v16 = vld [vmem:[#allocation2 + $0x208] sm:$0xff] }
  0xe7   :  { %v2229_v6 = vpop.eup %2228  ;;  %v506_v57 = vmax.f32 %v380_v38, 1e-24  ;;  %v383_v39 = vpop.xlane.xlu1 %382  ;;  %781 = vst [vmem:[#allocation5 + $0x198] sm:$0xff] %v2895_v46  ;;  %780 = vst [vmem:[#allocation5 + $0x190] sm:$0xff] %v2892_v33 }
  0xe8   :  { %v2231_v40 = vpop.eup %2230  ;;  %1849 = vxpose.xlu1.b32.cont [5/16] %v1848_v0, 128  ;;  %v507_v42 = vmax.f32 %v383_v39, 1e-24  ;;  %v2904_v21 = vmul.f32 %v2229_v6, %v3338_v41  ;;  %v2907_v45 = vmul.f32 %v2229_v6, %v3339_v44  ;;  %v2308_v39 = vld [vmem:[#allocation2 + $0x200] sm:$0xff]  ;;  %v2311_v41 = vld [vmem:[#allocation2 + $0x218] sm:$0xff] }
  0xe9   :  { %2240 = vrsqrt.f32 %v506_v57  ;;  %v2910_v48 = vmul.f32 %v2231_v40, %v3340_v54  ;;  %v2913_v49 = vmul.f32 %v2231_v40, %v3341_v3  ;;  %v1754_v57 = vpack.i.bf16 %v2817_v8, %v2814_v7 }
  0xea   :  { %2242 = vrsqrt.f32 %v507_v42  ;;  %1749 = vxpose.xlu0.b32.cont [11/16] %v1748_v20, 128  ;;  %v386_v50 = vpop.xlane.xlu0 %385  ;;  %783 = vst [vmem:[#allocation5 + $0x1a8] sm:$0xff] %v2907_v45  ;;  %782 = vst [vmem:[#allocation5 + $0x1a0] sm:$0xff] %v2904_v21  ;;  %v2310_v42 = vld [vmem:[#allocation2 + $0x210] sm:$0xff]  ;;  %v1856_v3 = vpack.i.bf16 %v2889_v27, %v2886_v13  ;;  %v2313_v13 = vld [vmem:[#allocation2 + $0x228] sm:$0xff] }
  0xeb   :  { %v2233_v1 = vpop.eup %2232  ;;  %v508_v63 = vmax.f32 %v386_v50, 1e-24  ;;  %v389_v58 = vpop.xlane.xlu1 %388  ;;  %785 = vst [vmem:[#allocation5 + $0x1b8] sm:$0xff] %v2913_v49  ;;  %784 = vst [vmem:[#allocation5 + $0x1b0] sm:$0xff] %v2910_v48 }
  0xec   :  { %v2235_v9 = vpop.eup %2234  ;;  %1851 = vxpose.xlu1.b32.cont [6/16] %v1850_v35, 128  ;;  %v509_v59 = vmax.f32 %v389_v58, 1e-24  ;;  %v2924_v22 = vmul.f32 %v2233_v1, %v3342_v23  ;;  %v2927_v5 = vmul.f32 %v2233_v1, %v3343_v51  ;;  %v2312_v58 = vld [vmem:[#allocation2 + $0x220] sm:$0xff]  ;;  %v2315_v23 = vld [vmem:[#allocation2 + $0x238] sm:$0xff] }
  0xed   :  { %2244 = vrsqrt.f32 %v508_v63  ;;  %v2930_v24 = vmul.f32 %v2235_v9, %v3344_v61  ;;  %v2933_v12 = vmul.f32 %v2235_v9, %v3345_v36  ;;  %v1756_v63 = vpack.i.bf16 %v2829_v25, %v2826_v37 }
  0xee   :  { %2246 = vrsqrt.f32 %v509_v59  ;;  %1751 = vxpose.xlu0.b32.cont [12/16] %v1750_v60, 128  ;;  %v392_v15 = vpop.xlane.xlu0 %391  ;;  %787 = vst [vmem:[#allocation5 + $0x1c8] sm:$0xff] %v2927_v5  ;;  %786 = vst [vmem:[#allocation5 + $0x1c0] sm:$0xff] %v2924_v22  ;;  %v2314_v59 = vld [vmem:[#allocation2 + $0x230] sm:$0xff]  ;;  %v1858_v36 = vpack.i.bf16 %v2895_v46, %v2892_v33  ;;  %v2317_v33 = vld [vmem:[#allocation2 + $0x248] sm:$0xff] }
  0xef   :  { %v2237_v2 = vpop.eup %2236  ;;  %v510_v17 = vmax.f32 %v392_v15, 1e-24  ;;  %v395_v43 = vpop.xlane.xlu1 %394  ;;  %789 = vst [vmem:[#allocation5 + $0x1d8] sm:$0xff] %v2933_v12  ;;  %788 = vst [vmem:[#allocation5 + $0x1d0] sm:$0xff] %v2930_v24 }
  0xf0   :  { %v2239_v28 = vpop.eup %2238  ;;  %1853 = vxpose.xlu1.b32.cont [7/16] %v1852_v19, 128  ;;  %v511_v31 = vmax.f32 %v395_v43, 1e-24  ;;  %v2943_v29 = vmul.f32 %v2304_v52, %v2237_v2  ;;  %v2945_v11 = vmul.f32 %v2305_v10, %v2237_v2  ;;  %v2316_v43 = vld [vmem:[#allocation2 + $0x240] sm:$0xff]  ;;  %v2319_v52 = vld [vmem:[#allocation2 + $0x258] sm:$0xff] }
  0xf1   :  { %2248 = vrsqrt.f32 %v510_v17  ;;  %v2947_v53 = vmul.f32 %v2306_v30, %v2239_v28  ;;  %v2949_v26 = vmul.f32 %v2307_v56, %v2239_v28  ;;  %v1758_v17 = vpack.i.bf16 %v2835_v18, %v2832_v14 }
  0xf2   :  { %2250 = vrsqrt.f32 %v511_v31  ;;  %1753 = vxpose.xlu0.b32.cont [13/16] %v1752_v55, 128  ;;  %v398_v32 = vpop.xlane.xlu0 %397  ;;  %791 = vst [vmem:[#allocation5 + $0x1e8] sm:$0xff] %v2945_v11  ;;  %790 = vst [vmem:[#allocation5 + $0x1e0] sm:$0xff] %v2943_v29  ;;  %v2318_v31 = vld [vmem:[#allocation2 + $0x250] sm:$0xff]  ;;  %v1860_v56 = vpack.i.bf16 %v2907_v45, %v2904_v21  ;;  %v2321_v21 = vld [vmem:[#allocation2 + $0x268] sm:$0xff] }
  0xf3   :  { %v2241_v47 = vpop.eup %2240  ;;  %v512_v62 = vmax.f32 %v398_v32, 1e-24  ;;  %v401_v38 = vpop.xlane.xlu1 %400  ;;  %793 = vst [vmem:[#allocation5 + $0x1f8] sm:$0xff] %v2949_v26  ;;  %792 = vst [vmem:[#allocation5 + $0x1f0] sm:$0xff] %v2947_v53 }
  0xf4   :  { %v2243_v0 = vpop.eup %2242  ;;  %1855 = vxpose.xlu1.b32.cont [8/16] %v1854_v34, 128  ;;  %v513_v6 = vmax.f32 %v401_v38, 1e-24  ;;  %v2959_v40 = vmul.f32 %v2308_v39, %v2241_v47  ;;  %v2961_v4 = vmul.f32 %v2309_v16, %v2241_v47  ;;  %v2320_v38 = vld [vmem:[#allocation2 + $0x260] sm:$0xff]  ;;  %v2323_v39 = vld [vmem:[#allocation2 + $0x278] sm:$0xff] }
  0xf5   :  { %2252 = vrsqrt.f32 %v512_v62  ;;  %v2963_v20 = vmul.f32 %v2310_v42, %v2243_v0  ;;  %v2965_v44 = vmul.f32 %v2311_v41, %v2243_v0  ;;  %v1862_v41 = vpack.i.bf16 %v2913_v49, %v2910_v48  ;;  %v2325_v48 = vld [vmem:[#allocation2 + $0x288] sm:$0xff] }
  0xf6   :  { %2254 = vrsqrt.f32 %v513_v6  ;;  %1755 = vxpose.xlu0.b32.cont [14/16] %v1754_v57, 128  ;;  %v404_v54 = vpop.xlane.xlu0 %403  ;;  %795 = vst [vmem:[#allocation5 + $0x208] sm:$0xff] %v2961_v4  ;;  %794 = vst [vmem:[#allocation5 + $0x200] sm:$0xff] %v2959_v40  ;;  %v1952_v62 = vpack.i.bf16 %v2961_v4, %v2959_v40  ;;  %v2322_v6 = vld [vmem:[#allocation2 + $0x270] sm:$0xff] }
  0xf7   :  { %v2245_v7 = vpop.eup %2244  ;;  %v514_v8 = vmax.f32 %v404_v54, 1e-24  ;;  %v407_v50 = vpop.xlane.xlu1 %406  ;;  %797 = vst [vmem:[#allocation5 + $0x218] sm:$0xff] %v2965_v44  ;;  %796 = vst [vmem:[#allocation5 + $0x210] sm:$0xff] %v2963_v20 }
  0xf8   :  { %v2247_v35 = vpop.eup %2246  ;;  %1857 = vxpose.xlu1.b32.cont [9/16] %v1856_v3, 128  ;;  %v515_v1 = vmax.f32 %v407_v50, 1e-24  ;;  %v2975_v9 = vmul.f32 %v2312_v58, %v2245_v7  ;;  %v2977_v27 = vmul.f32 %v2313_v13, %v2245_v7  ;;  %v2324_v50 = vld [vmem:[#allocation2 + $0x280] sm:$0xff]  ;;  %v2327_v58 = vld [vmem:[#allocation2 + $0x298] sm:$0xff] }
  0xf9   :  { %2256 = vrsqrt.f32 %v514_v8  ;;  %v2979_v60 = vmul.f32 %v2314_v59, %v2247_v35  ;;  %v2981_v51 = vmul.f32 %v2315_v23, %v2247_v35  ;;  %v1954_v8 = vpack.i.bf16 %v2965_v44, %v2963_v20 }
  0xfa   :  { %2258 = vrsqrt.f32 %v515_v1  ;;  %1757 = vxpose.xlu0.b32.cont [15/16] %v1756_v63, 128  ;;  %v410_v61 = vpop.xlane.xlu0 %409  ;;  %799 = vst [vmem:[#allocation5 + $0x228] sm:$0xff] %v2977_v27  ;;  %798 = vst [vmem:[#allocation5 + $0x220] sm:$0xff] %v2975_v9  ;;  %v2326_v1 = vld [vmem:[#allocation2 + $0x290] sm:$0xff]  ;;  %v1864_v23 = vpack.i.bf16 %v2927_v5, %v2924_v22  ;;  %v2329_v22 = vld [vmem:[#allocation2 + $0x2a8] sm:$0xff] }
  0xfb   :  { %v2249_v37 = vpop.eup %2248  ;;  %v516_v25 = vmax.f32 %v410_v61, 1e-24  ;;  %v413_v15 = vpop.xlane.xlu1 %412  ;;  %801 = vst [vmem:[#allocation5 + $0x238] sm:$0xff] %v2981_v51  ;;  %800 = vst [vmem:[#allocation5 + $0x230] sm:$0xff] %v2979_v60 }
  0xfc   :  { %v2251_v19 = vpop.eup %2250  ;;  %1859 = vxpose.xlu1.b32.cont [10/16] %v1858_v36, 128  ;;  %v517_v2 = vmax.f32 %v413_v15, 1e-24  ;;  %v2991_v28 = vmul.f32 %v2316_v43, %v2249_v37  ;;  %v2993_v46 = vmul.f32 %v2317_v33, %v2249_v37  ;;  %v2328_v15 = vld [vmem:[#allocation2 + $0x2a0] sm:$0xff]  ;;  %v2331_v43 = vld [vmem:[#allocation2 + $0x2b8] sm:$0xff] }
  0xfd   :  { %2260 = vrsqrt.f32 %v516_v25  ;;  %v2995_v55 = vmul.f32 %v2318_v31, %v2251_v19  ;;  %v2997_v10 = vmul.f32 %v2319_v52, %v2251_v19  ;;  %v1956_v25 = vpack.i.bf16 %v2977_v27, %v2975_v9 }
  0xfe   :  { %2262 = vrsqrt.f32 %v517_v2  ;;  %1759 = vxpose.xlu0.b32.end [16/16] %v1758_v17, 128  ;;  %v416_v30 = vpop.xlane.xlu0 %415  ;;  %803 = vst [vmem:[#allocation5 + $0x248] sm:$0xff] %v2993_v46  ;;  %802 = vst [vmem:[#allocation5 + $0x240] sm:$0xff] %v2991_v28  ;;  %v2330_v2 = vld [vmem:[#allocation2 + $0x2b0] sm:$0xff]  ;;  %v1866_v31 = vpack.i.bf16 %v2933_v12, %v2930_v24  ;;  %v2333_v12 = vld [vmem:[#allocation2 + $0x2c8] sm:$0xff] }
  0xff   :  { %v2253_v14 = vpop.eup %2252  ;;  %v518_v18 = vmax.f32 %v416_v30, 1e-24  ;;  %v419_v32 = vpop.xlane.xlu1 %418  ;;  %805 = vst [vmem:[#allocation5 + $0x258] sm:$0xff] %v2997_v10  ;;  %804 = vst [vmem:[#allocation5 + $0x250] sm:$0xff] %v2995_v55 }
 0x100   :  { %v2255_v34 = vpop.eup %2254  ;;  %1861 = vxpose.xlu1.b32.cont [11/16] %v1860_v56, 128  ;;  %v519_v47 = vmax.f32 %v419_v32, 1e-24  ;;  %v3007_v0 = vmul.f32 %v2320_v38, %v2253_v14  ;;  %v3009_v45 = vmul.f32 %v2321_v21, %v2253_v14  ;;  %v1958_v14 = vpack.i.bf16 %v2981_v51, %v2979_v60  ;;  %v2332_v32 = vld [vmem:[#allocation2 + $0x2c0] sm:$0xff]  ;;  %v2335_v38 = vld [vmem:[#allocation2 + $0x2d8] sm:$0xff] }
 0x101   :  { %2264 = vrsqrt.f32 %v518_v18  ;;  %v3011_v57 = vmul.f32 %v2322_v6, %v2255_v34  ;;  %v3013_v16 = vmul.f32 %v2323_v39, %v2255_v34  ;;  %v1868_v6 = vpack.i.bf16 %v2945_v11, %v2943_v29  ;;  %v2336_v29 = vld [vmem:[#allocation2 + $0x2e0] sm:$0xff] }
 0x102   :  { %2266 = vrsqrt.f32 %v519_v47  ;;  %1953 = vxpose.xlu0.b32.start [1/16] %v1952_v62, 128  ;;  %v422_v42 = vpop.xlane.xlu0 %421  ;;  %807 = vst [vmem:[#allocation5 + $0x268] sm:$0xff] %v3009_v45  ;;  %806 = vst [vmem:[#allocation5 + $0x260] sm:$0xff] %v3007_v0  ;;  %v2334_v47 = vld [vmem:[#allocation2 + $0x2d0] sm:$0xff] }
 0x103   :  { %v2257_v40 = vpop.eup %2256  ;;  %v520_v4 = vmax.f32 %v422_v42, 1e-24  ;;  %v425_v54 = vpop.xlane.xlu1 %424  ;;  %809 = vst [vmem:[#allocation5 + $0x278] sm:$0xff] %v3013_v16  ;;  %808 = vst [vmem:[#allocation5 + $0x270] sm:$0xff] %v3011_v57 }
 0x104   :  { %v2259_v3 = vpop.eup %2258  ;;  %1863 = vxpose.xlu1.b32.cont [12/16] %v1862_v41, 128  ;;  %v521_v7 = vmax.f32 %v425_v54, 1e-24  ;;  %v3023_v35 = vmul.f32 %v2324_v50, %v2257_v40  ;;  %v3025_v49 = vmul.f32 %v2325_v48, %v2257_v40  ;;  %v1960_v40 = vpack.i.bf16 %v2993_v46, %v2991_v28  ;;  %v2337_v54 = vld [vmem:[#allocation2 + $0x2e8] sm:$0xff]  ;;  %v2339_v50 = vld [vmem:[#allocation2 + $0x2f8] sm:$0xff] }
 0x105   :  { %2268 = vrsqrt.f32 %v520_v4  ;;  %v3027_v63 = vmul.f32 %v2326_v1, %v2259_v3  ;;  %v3029_v13 = vmul.f32 %v2327_v58, %v2259_v3  ;;  %v1870_v1 = vpack.i.bf16 %v2949_v26, %v2947_v53  ;;  %v2341_v26 = vld [vmem:[#allocation2 + $0x308] sm:$0xff] }
 0x106   :  { %2270 = vrsqrt.f32 %v521_v7  ;;  %1955 = vxpose.xlu0.b32.cont [2/16] %v1954_v8, 128  ;;  %v428_v59 = vpop.xlane.xlu0 %427  ;;  %811 = vst [vmem:[#allocation5 + $0x288] sm:$0xff] %v3025_v49  ;;  %810 = vst [vmem:[#allocation5 + $0x280] sm:$0xff] %v3023_v35  ;;  %v2338_v7 = vld [vmem:[#allocation2 + $0x2f0] sm:$0xff] }
 0x107   :  { %v2261_v20 = vpop.eup %2260  ;;  %v522_v44 = vmax.f32 %v428_v59, 1e-24  ;;  %v431_v61 = vpop.xlane.xlu1 %430  ;;  %813 = vst [vmem:[#allocation5 + $0x298] sm:$0xff] %v3029_v13  ;;  %812 = vst [vmem:[#allocation5 + $0x290] sm:$0xff] %v3027_v63 }
 0x108   :  { %v2263_v36 = vpop.eup %2262  ;;  %1865 = vxpose.xlu1.b32.cont [13/16] %v1864_v23, 128  ;;  %v523_v37 = vmax.f32 %v431_v61, 1e-24  ;;  %v3039_v19 = vmul.f32 %v2328_v15, %v2261_v20  ;;  %v3041_v5 = vmul.f32 %v2329_v22, %v2261_v20  ;;  %v1962_v20 = vpack.i.bf16 %v2997_v10, %v2995_v55  ;;  %v2343_v15 = vld [vmem:[#allocation2 + $0x318] sm:$0xff] }
 0x109   :  { %2272 = vrsqrt.f32 %v522_v44  ;;  %v3043_v17 = vmul.f32 %v2330_v2, %v2263_v36  ;;  %v3045_v33 = vmul.f32 %v2331_v43, %v2263_v36  ;;  %v2340_v44 = vld [vmem:[#allocation2 + $0x300] sm:$0xff]  ;;  %v1964_v55 = vpack.i.bf16 %v3009_v45, %v3007_v0 }
 0x10a   :  { %2274 = vrsqrt.f32 %v523_v37  ;;  %1957 = vxpose.xlu0.b32.cont [3/16] %v1956_v25, 128  ;;  %v434_v52 = vpop.xlane.xlu0 %433  ;;  %815 = vst [vmem:[#allocation5 + $0x2a8] sm:$0xff] %v3041_v5  ;;  %814 = vst [vmem:[#allocation5 + $0x2a0] sm:$0xff] %v3039_v19  ;;  %v2342_v37 = vld [vmem:[#allocation2 + $0x310] sm:$0xff] }
 0x10b   :  { %v2265_v9 = vpop.eup %2264  ;;  %v524_v27 = vmax.f32 %v434_v52, 1e-24  ;;  %v437_v30 = vpop.xlane.xlu1 %436  ;;  %817 = vst [vmem:[#allocation5 + $0x2b8] sm:$0xff] %v3045_v33  ;;  %816 = vst [vmem:[#allocation5 + $0x2b0] sm:$0xff] %v3043_v17 }
 0x10c   :  { %v2267_v56 = vpop.eup %2266  ;;  %1867 = vxpose.xlu1.b32.cont [14/16] %v1866_v31, 128  ;;  %v525_v18 = vmax.f32 %v437_v30, 1e-24  ;;  %v3055_v24 = vmul.f32 %v2332_v32, %v2265_v9  ;;  %v3057_v34 = vmul.f32 %v2333_v12, %v2265_v9  ;;  %v2344_v30 = vld [vmem:[#allocation2 + $0x320] sm:$0xff]  ;;  %v2346_v12 = vld [vmem:[#allocation2 + $0x330] sm:$0xff] }
 0x10d   :  { %2276 = vrsqrt.f32 %v524_v27  ;;  %v3059_v62 = vmul.f32 %v2334_v47, %v2267_v56  ;;  %v3061_v21 = vmul.f32 %v2335_v38, %v2267_v56  ;;  %v2347_v38 = vld [vmem:[#allocation2 + $0x338] sm:$0xff] }
 0x10e   :  { %1959 = vxpose.xlu0.b32.cont [4/16] %v1958_v14, 128  ;;  %2278 = vrsqrt.f32 %v525_v18  ;;  %v440_v60 = vpop.xlane.xlu0 %439  ;;  %819 = vst [vmem:[#allocation5 + $0x2c8] sm:$0xff] %v3057_v34  ;;  %818 = vst [vmem:[#allocation5 + $0x2c0] sm:$0xff] %v3055_v24  ;;  %v2345_v14 = vld [vmem:[#allocation2 + $0x328] sm:$0xff] }
 0x10f   :  { %v2269_v51 = vpop.eup %2268  ;;  %v526_v39 = vmax.f32 %v440_v60, 1e-24  ;;  %v443_v42 = vpop.xlane.xlu1 %442  ;;  %821 = vst [vmem:[#allocation5 + $0x2d8] sm:$0xff] %v3061_v21  ;;  %820 = vst [vmem:[#allocation5 + $0x2d0] sm:$0xff] %v3059_v62  ;;  %v1966_v60 = vpack.i.bf16 %v3013_v16, %v3011_v57 }
 0x110   :  { %v2271_v41 = vpop.eup %2270  ;;  %1869 = vxpose.xlu1.b32.cont [15/16] %v1868_v6, 128  ;;  %v527_v4 = vmax.f32 %v443_v42, 1e-24  ;;  %v3071_v11 = vmul.f32 %v2336_v29, %v2269_v51  ;;  %v3073_v3 = vmul.f32 %v2337_v54, %v2269_v51  ;;  %v2349_v29 = vld [vmem:[#allocation2 + $0x348] sm:$0xff] }
 0x111   :  { %2280 = vrsqrt.f32 %v526_v39  ;;  %v3075_v8 = vmul.f32 %v2338_v7, %v2271_v41  ;;  %v3077_v48 = vmul.f32 %v2339_v50, %v2271_v41  ;;  %v2350_v50 = vld [vmem:[#allocation2 + $0x350] sm:$0xff] }
 0x112   :  { %1961 = vxpose.xlu0.b32.cont [5/16] %v1960_v40, 128  ;;  %2282 = vrsqrt.f32 %v527_v4  ;;  %v446_v28 = vpop.xlane.xlu0 %445  ;;  %823 = vst [vmem:[#allocation5 + $0x2e8] sm:$0xff] %v3073_v3  ;;  %822 = vst [vmem:[#allocation5 + $0x2e0] sm:$0xff] %v3071_v11  ;;  %v2348_v40 = vld [vmem:[#allocation2 + $0x340] sm:$0xff] }
 0x113   :  { %v2273_v46 = vpop.eup %2272  ;;  %v528_v58 = vmax.f32 %v446_v28, 1e-24  ;;  %v449_v59 = vpop.xlane.xlu1 %448  ;;  %825 = vst [vmem:[#allocation5 + $0x2f8] sm:$0xff] %v3077_v48  ;;  %824 = vst [vmem:[#allocation5 + $0x2f0] sm:$0xff] %v3075_v8  ;;  %v2351_v28 = vld [vmem:[#allocation2 + $0x358] sm:$0xff] }
 0x114   :  { %v2275_v23 = vpop.eup %2274  ;;  %1871 = vxpose.xlu1.b32.end [16/16] %v1870_v1, 128  ;;  %v698_v53 = vmul.f32 %v2340_v44, %v2273_v46  ;;  %v699_v61 = vmul.f32 %v2341_v26, %v2273_v46  ;;  %v529_v36 = vmax.f32 %v449_v59, 1e-24  ;;  %v2352_v26 = vld [vmem:[#allocation2 + $0x360] sm:$0xff] }
 0x115   :  { %v700_v25 = vmul.f32 %v2342_v37, %v2275_v23  ;;  %v701_v22 = vmul.f32 %v2343_v15, %v2275_v23  ;;  %2284 = vrsqrt.f32 %v528_v58  ;;  %v1968_v58 = vpack.i.bf16 %v3025_v49, %v3023_v35  ;;  %v2355_v35 = vld [vmem:[#allocation2 + $0x378] sm:$0xff] }
 0x116   :  { %1963 = vxpose.xlu0.b32.cont [6/16] %v1962_v20, 128  ;;  %827 = vst [vmem:[#allocation5 + $0x308] sm:$0xff] %v699_v61  ;;  %v2064_v2 = vpack.i.bf16 %v699_v61, %v698_v53  ;;  %826 = vst [vmem:[#allocation5 + $0x300] sm:$0xff] %v698_v53  ;;  %2286 = vrsqrt.f32 %v529_v36  ;;  %v452_v43 = vpop.xlane.xlu0 %451  ;;  %v2353_v36 = vld [vmem:[#allocation2 + $0x368] sm:$0xff] }
 0x117   :  { %v2277_v31 = vpop.eup %2276  ;;  %829 = vst [vmem:[#allocation5 + $0x318] sm:$0xff] %v701_v22  ;;  %828 = vst [vmem:[#allocation5 + $0x310] sm:$0xff] %v700_v25  ;;  %v455_v10 = vpop.xlane.xlu1 %454  ;;  %v530_v52 = vmax.f32 %v452_v43, 1e-24  ;;  %v2066_v27 = vpack.i.bf16 %v701_v22, %v700_v25  ;;  %v2354_v25 = vld [vmem:[#allocation2 + $0x370] sm:$0xff]  ;;  %v1970_v43 = vpack.i.bf16 %v3029_v13, %v3027_v63 }
 0x118   :  { %v2279_v9 = vpop.eup %2278  ;;  %2065 = vxpose.xlu1.b32.start [1/16] %v2064_v2, 128  ;;  %v702_v56 = vmul.f32 %v2344_v30, %v2277_v31  ;;  %v703_v18 = vmul.f32 %v2345_v14, %v2277_v31  ;;  %v531_v32 = vmax.f32 %v455_v10, 1e-24  ;;  %v2358_v63 = vld [vmem:[#allocation2 + $0x390] sm:$0xff] }
 0x119   :  { %v3089_v47 = vmul.f32 %v2346_v12, %v2279_v9  ;;  %v705_v6 = vmul.f32 %v2347_v38, %v2279_v9  ;;  %2288 = vrsqrt.f32 %v530_v52  ;;  %v1972_v38 = vpack.i.bf16 %v3041_v5, %v3039_v19 }
 0x11a   :  { %1965 = vxpose.xlu0.b32.cont [7/16] %v1964_v55, 128  ;;  %831 = vst [vmem:[#allocation5 + $0x328] sm:$0xff] %v703_v18  ;;  %830 = vst [vmem:[#allocation5 + $0x320] sm:$0xff] %v702_v56  ;;  %2290 = vrsqrt.f32 %v531_v32  ;;  %v458_v0 = vpop.xlane.xlu0 %457  ;;  %v2068_v41 = vpack.i.bf16 %v703_v18, %v702_v56  ;;  %v2357_v56 = vld [vmem:[#allocation2 + $0x388] sm:$0xff]  ;;  %v2359_v18 = vld [vmem:[#allocation2 + $0x398] sm:$0xff]  ;;  %v1974_v19 = vpack.i.bf16 %v3045_v33, %v3043_v17 }
 0x11b   :  { %v2281_v45 = vpop.eup %2280  ;;  %833 = vst [vmem:[#allocation5 + $0x338] sm:$0xff] %v705_v6  ;;  %832 = vst [vmem:[#allocation5 + $0x330] sm:$0xff] %v3089_v47  ;;  %v461_v51 = vpop.xlane.xlu1 %460  ;;  %v532_v39 = vmax.f32 %v458_v0, 1e-24  ;;  %v2070_v44 = vpack.i.bf16 %v705_v6, %v3089_v47  ;;  %v2360_v0 = vld [vmem:[#allocation2 + $0x3a0] sm:$0xff]  ;;  %v1976_v17 = vpack.i.bf16 %v3057_v34, %v3055_v24  ;;  %v1978_v24 = vpack.i.bf16 %v3061_v21, %v3059_v62 }
 0x11c   :  { %v2283_v42 = vpop.eup %2282  ;;  %2067 = vxpose.xlu1.b32.cont [2/16] %v2066_v27, 128  ;;  %v3094_v4 = vmul.f32 %v2348_v40, %v2281_v45  ;;  %v3096_v54 = vmul.f32 %v2349_v29, %v2281_v45  ;;  %v533_v7 = vmax.f32 %v461_v51, 1e-24  ;;  %v2356_v27 = vld [vmem:[#allocation2 + $0x380] sm:$0xff] }
 0x11d   :  { %v3098_v1 = vmul.f32 %v2350_v50, %v2283_v42  ;;  %v3100_v57 = vmul.f32 %v2351_v28, %v2283_v42  ;;  %2292 = vrsqrt.f32 %v532_v39  ;;  %v2362_v39 = vld [vmem:[#allocation2 + $0x3b0] sm:$0xff]  ;;  %v2365_v50 = vld [vmem:[#allocation2 + $0x3c8] sm:$0xff] }
 0x11e   :  { %1967 = vxpose.xlu0.b32.cont [8/16] %v1966_v60, 128  ;;  %835 = vst [vmem:[#allocation5 + $0x348] sm:$0xff] %v3096_v54  ;;  %834 = vst [vmem:[#allocation5 + $0x340] sm:$0xff] %v3094_v4  ;;  %2294 = vrsqrt.f32 %v533_v7  ;;  %v464_v16 = vpop.xlane.xlu0 %463  ;;  %v2072_v52 = vpack.i.bf16 %v3096_v54, %v3094_v4  ;;  %v2361_v60 = vld [vmem:[#allocation2 + $0x3a8] sm:$0xff]  ;;  %v2364_v54 = vld [vmem:[#allocation2 + $0x3c0] sm:$0xff] }
 0x11f   :  { %v2285_v46 = vpop.eup %2284  ;;  %837 = vst [vmem:[#allocation5 + $0x358] sm:$0xff] %v3100_v57  ;;  %836 = vst [vmem:[#allocation5 + $0x350] sm:$0xff] %v3098_v1  ;;  %v467_v59 = vpop.xlane.xlu1 %466  ;;  %v534_v23 = vmax.f32 %v464_v16, 1e-24  ;;  %v2074_v6 = vpack.i.bf16 %v3100_v57, %v3098_v1  ;;  %v2366_v28 = vld [vmem:[#allocation2 + $0x3d0] sm:$0xff]  ;;  %v2367_v16 = vld [vmem:[#allocation2 + $0x3d8] sm:$0xff] }
 0x120   :  { %v2287_v20 = vpop.eup %2286  ;;  %2069 = vxpose.xlu1.b32.cont [3/16] %v2068_v41, 128  ;;  %v535_v53 = vmax.f32 %v467_v59, 1e-24  ;;  %v3109_v61 = vmul.f32 %v2352_v26, %v2285_v46  ;;  %v3111_v37 = vmul.f32 %v2353_v36, %v2285_v46  ;;  %v2363_v41 = vld [vmem:[#allocation2 + $0x3b8] sm:$0xff]  ;;  %v2370_v26 = vld [vmem:[#allocation2 + $0x3f0] sm:$0xff] }
 0x121   :  { %v3113_v15 = vmul.f32 %v2354_v25, %v2287_v20  ;;  %v3115_v49 = vmul.f32 %v2355_v35, %v2287_v20  ;;  %2296 = vrsqrt.f32 %v534_v23  ;;  %v2368_v23 = vld [vmem:[#allocation2 + $0x3e0] sm:$0xff]  ;;  %v2371_v36 = vld [vmem:[#allocation2 + $0x3f8] sm:$0xff]  ;;  %v1980_v25 = vpack.i.bf16 %v3073_v3, %v3071_v11 }
 0x122   :  { %1969 = vxpose.xlu0.b32.cont [9/16] %v1968_v58, 128  ;;  %2298 = vrsqrt.f32 %v535_v53  ;;  %839 = vst [vmem:[#allocation5 + $0x368] sm:$0xff] %v3111_v37  ;;  %838 = vst [vmem:[#allocation5 + $0x360] sm:$0xff] %v3109_v61  ;;  %v470_v22 = vpop.xlane.xlu0 %469  ;;  %v2076_v5 = vpack.i.bf16 %v3111_v37, %v3109_v61  ;;  %v1982_v35 = vpack.i.bf16 %v3077_v48, %v3075_v8 }
 0x123   :  { %v2289_v2 = vpop.eup %2288  ;;  %v473_v31 = vpop.xlane.xlu1 %472  ;;  %841 = vst [vmem:[#allocation5 + $0x378] sm:$0xff] %v3115_v49  ;;  %840 = vst [vmem:[#allocation5 + $0x370] sm:$0xff] %v3113_v15  ;;  %v536_v55 = vmax.f32 %v470_v22, 1e-24  ;;  %v2078_v33 = vpack.i.bf16 %v3115_v49, %v3113_v15 }
 0x124   :  { %v2291_v10 = vpop.eup %2290  ;;  %2071 = vxpose.xlu1.b32.cont [4/16] %v2070_v44, 128  ;;  %v537_v9 = vmax.f32 %v473_v31, 1e-24  ;;  %v3125_v30 = vmul.f32 %v2356_v27, %v2289_v2  ;;  %v3127_v14 = vmul.f32 %v2357_v56, %v2289_v2  ;;  %v2369_v44 = vld [vmem:[#allocation2 + $0x3e8] sm:$0xff] }
 0x125   :  { %2300 = vrsqrt.f32 %v536_v55  ;;  %v3129_v13 = vmul.f32 %v2358_v63, %v2291_v10  ;;  %v3131_v32 = vmul.f32 %v2359_v18, %v2291_v10 }
 0x126   :  { %1971 = vxpose.xlu0.b32.cont [10/16] %v1970_v43, 128  ;;  %2302 = vrsqrt.f32 %v537_v9  ;;  %843 = vst [vmem:[#allocation5 + $0x388] sm:$0xff] %v3127_v14  ;;  %842 = vst [vmem:[#allocation5 + $0x380] sm:$0xff] %v3125_v30  ;;  %v2080_v34 = vpack.i.bf16 %v3127_v14, %v3125_v30 }
 0x127   :  { %v2293_v12 = vpop.eup %2292  ;;  %845 = vst [vmem:[#allocation5 + $0x398] sm:$0xff] %v3131_v32  ;;  %844 = vst [vmem:[#allocation5 + $0x390] sm:$0xff] %v3129_v13  ;;  %v2082_v15 = vpack.i.bf16 %v3131_v32, %v3129_v13 }
 0x128   :  { %v2295_v47 = vpop.eup %2294  ;;  %2073 = vxpose.xlu1.b32.cont [5/16] %v2072_v52, 128  ;;  %v718_v45 = vmul.f32 %v2360_v0, %v2293_v12  ;;  %v719_v51 = vmul.f32 %v2361_v60, %v2293_v12 }
 0x129   :  { %v720_v42 = vmul.f32 %v2362_v39, %v2295_v47  ;;  %v721_v40 = vmul.f32 %v2363_v41, %v2295_v47 }
 0x12a   :  { %1973 = vxpose.xlu0.b32.cont [11/16] %v1972_v38, 128  ;;  %847 = vst [vmem:[#allocation5 + $0x3a8] sm:$0xff] %v719_v51  ;;  %846 = vst [vmem:[#allocation5 + $0x3a0] sm:$0xff] %v718_v45  ;;  %v2084_v49 = vpack.i.bf16 %v719_v51, %v718_v45 }
 0x12b   :  { %v2297_v4 = vpop.eup %2296  ;;  %849 = vst [vmem:[#allocation5 + $0x3b8] sm:$0xff] %v721_v40  ;;  %848 = vst [vmem:[#allocation5 + $0x3b0] sm:$0xff] %v720_v42  ;;  %v2086_v62 = vpack.i.bf16 %v721_v40, %v720_v42 }
 0x12c   :  { %v2299_v29 = vpop.eup %2298  ;;  %2075 = vxpose.xlu1.b32.cont [6/16] %v2074_v6, 128  ;;  %v722_v7 = vmul.f32 %v2364_v54, %v2297_v4  ;;  %v723_v1 = vmul.f32 %v2365_v50, %v2297_v4 }
 0x12d   :  { %v724_v57 = vmul.f32 %v2366_v28, %v2299_v29  ;;  %v725_v46 = vmul.f32 %v2367_v16, %v2299_v29 }
 0x12e   :  { %1975 = vxpose.xlu0.b32.cont [12/16] %v1974_v19, 128  ;;  %851 = vst [vmem:[#allocation5 + $0x3c8] sm:$0xff] %v723_v1  ;;  %850 = vst [vmem:[#allocation5 + $0x3c0] sm:$0xff] %v722_v7  ;;  %v2088_v22 = vpack.i.bf16 %v723_v1, %v722_v7 }
 0x12f   :  { %v2301_v58 = vpop.eup %2300  ;;  %853 = vst [vmem:[#allocation5 + $0x3d8] sm:$0xff] %v725_v46  ;;  %852 = vst [vmem:[#allocation5 + $0x3d0] sm:$0xff] %v724_v57  ;;  %v2090_v43 = vpack.i.bf16 %v725_v46, %v724_v57 }
 0x130   :  { %v2303_v59 = vpop.eup %2302  ;;  %2077 = vxpose.xlu1.b32.cont [7/16] %v2076_v5, 128  ;;  %v726_v20 = vmul.f32 %v2368_v23, %v2301_v58  ;;  %v727_v53 = vmul.f32 %v2369_v44, %v2301_v58 }
 0x131   :  { %v728_v61 = vmul.f32 %v2370_v26, %v2303_v59  ;;  %v729_v37 = vmul.f32 %v2371_v36, %v2303_v59 }
 0x132   :  { %1977 = vxpose.xlu0.b32.cont [13/16] %v1976_v17, 128  ;;  %855 = vst [vmem:[#allocation5 + $0x3e8] sm:$0xff] %v727_v53  ;;  %854 = vst [vmem:[#allocation5 + $0x3e0] sm:$0xff] %v726_v20  ;;  %v2092_v11 = vpack.i.bf16 %v727_v53, %v726_v20 }
 0x133   :  { %857 = vst [vmem:[#allocation5 + $0x3f8] sm:$0xff] %v729_v37  ;;  %856 = vst [vmem:[#allocation5 + $0x3f0] sm:$0xff] %v728_v61  ;;  %v2094_v55 = vpack.i.bf16 %v729_v37, %v728_v61 }
 0x134   :  { %2079 = vxpose.xlu1.b32.cont [8/16] %v2078_v33, 128 }
 0x136   :  { %1979 = vxpose.xlu0.b32.cont [14/16] %v1978_v24, 128 }
 0x138   :  { %2081 = vxpose.xlu1.b32.cont [9/16] %v2080_v34, 128 }
 0x13a   :  { %1981 = vxpose.xlu0.b32.cont [15/16] %v1980_v25, 128 }
 0x13c   :  { %2083 = vxpose.xlu1.b32.cont [10/16] %v2082_v15, 128 }
 0x13e   :  { %1983 = vxpose.xlu0.b32.end [16/16] %v1982_v35, 128 }
 0x140   :  { %2085 = vxpose.xlu1.b32.cont [11/16] %v2084_v49, 128 }
 0x142   :  { %v1760_v21 = vpop.trf.xlu0 }
 0x143   :  { %v1764_v48 = vunpack.i.h.bf16 %v1760_v21  ;;  %v1761_v52 = vunpack.i.l.bf16 %v1760_v21 }
 0x144   :  { %2087 = vxpose.xlu1.b32.cont [12/16] %v2086_v62, 128 }
 0x146   :  { %v1765_v2 = vpop.trf.xlu0 }
 0x147   :  { %v1769_v56 = vunpack.i.h.bf16 %v1765_v2 }
 0x148   :  { %2089 = vxpose.xlu1.b32.cont [13/16] %v2088_v22, 128 }
 0x14a   :  { %v1770_v31 = vpop.trf.xlu0 }
 0x14c   :  { %2091 = vxpose.xlu1.b32.cont [14/16] %v2090_v43, 128 }
 0x14e   :  { %v1775_v3 = vpop.trf.xlu0 }
 0x150   :  { %2093 = vxpose.xlu1.b32.cont [15/16] %v2092_v11, 128 }
 0x152   :  { %v3159_v10 = vpop.trf.xlu0 }
 0x154   :  { %2095 = vxpose.xlu1.b32.end [16/16] %v2094_v55, 128 }
 0x156   :  { %v3161_v8 = vpop.trf.xlu0 }
 0x158   :  { %v1872_v9 = vpop.trf.xlu1 }
 0x159   :  { %v1876_v27 = vunpack.i.h.bf16 %v1872_v9  ;;  %v1873_v30 = vunpack.i.l.bf16 %v1872_v9 }
 0x15a   :  { %v3163_v14 = vpop.trf.xlu0 }
 0x15b   :  { %2405 = shalt.err (!%p2402_p12)
}
 0x15c   :  { %s2406_s27 = scalar_lea.hbm %s3278_s1, 16384 }
 0x15d   :  { %p2407_p13 = scmp.ne.s32.totalorder %s3278_s1, %s2406_s27  ;;  %p2410_p0 = scmp.lt.u32.totalorder %s2406_s27, %s3278_s1 }
 0x15f   :  { %p2412_p1 = pnand %p2410_p0, %p2407_p13 }
 0x161   :  { %2415 = shalt.err (!%p2412_p1)
}
 0x162   :  { %1573 = dma.vmem_to_hbm [thread:$0]  %s1568_s23, 16384, %s3278_s1, [#allocation4], %s2445_s19, %s2445_s19, %s2446_s20   ;;  %v1691_v63 = vpack.c.bf16 %v1876_v27, %v1764_v48  ;;  %v1659_v13 = vpack.c.bf16 %v1873_v30, %v1761_v52  ;;  %v1766_v18 = vunpack.i.l.bf16 %v1765_v2  ;;  %v1877_v32 = vpop.trf.xlu1  ;;  %v1774_v38 = vunpack.i.h.bf16 %v1770_v31  ;;  %v3180_v6 = vpop.trf.xlu0 }
 0x163   :  { %v1881_v12 = vunpack.i.h.bf16 %v1877_v32  ;;  %v1878_v47 = vunpack.i.l.bf16 %v1877_v32  ;;  %v1771_v60 = vunpack.i.l.bf16 %v1770_v31  ;;  %v1779_v41 = vunpack.i.h.bf16 %v1775_v3  ;;  %s2448_s1 = smov [#allocation6]  }
 0x164   :  { %1530 = vst [vmem:[#allocation6 + $0x100] sm:$0xff] %v1691_v63  ;;  %1498 = vst [vmem:[#allocation6] sm:$0xff] %v1659_v13  ;;  %v1776_v19 = vunpack.i.l.bf16 %v1775_v3  ;;  %v1784_v50 = vunpack.i.h.bf16 %v3159_v10  ;;  %v1781_v16 = vunpack.i.l.bf16 %v3159_v10  ;;  %v1789_v17 = vunpack.i.h.bf16 %v3161_v8  ;;  %s1579_s6 = sshll.u32 %s2448_s1, 4  ;;  %s1580_s6 = int_to_ptr.vmem [resolvable:$true] %s1579_s6 }
 0x165   :  { %v1693_v0 = vpack.c.bf16 %v1881_v12, %v1769_v56  ;;  %v1661_v45 = vpack.c.bf16 %v1878_v47, %v1766_v18  ;;  %v1786_v44 = vunpack.i.l.bf16 %v3161_v8  ;;  %v1794_v36 = vunpack.i.h.bf16 %v3163_v14  ;;  %s2416_s7 = scalar_lea.vmem %s1580_s6, 8192  ;;  %p2421_p3 = scmp.lt.s32.totalorder %s1580_s6, %s1580_s6 }
 0x166   :  { %v1882_v51 = vpop.trf.xlu1  ;;  %v3182_v40 = vpop.trf.xlu0  ;;  %v1791_v25 = vunpack.i.l.bf16 %v3163_v14  ;;  %v1799_v62 = vunpack.i.h.bf16 %v3180_v6  ;;  %v1796_v43 = vunpack.i.l.bf16 %v3180_v6  ;;  %p2417_p2 = scmp.ne.s32.totalorder %s1580_s6, %s2416_s7  ;;  %p2422_p4 = scmp.lt.s32.totalorder %s2416_s7, %s2416_s7 }
 0x167   :  { %1532 = vst [vmem:[#allocation6 + $0x110] sm:$0xff] %v1693_v0  ;;  %1500 = vst [vmem:[#allocation6 + $0x10] sm:$0xff] %v1661_v45  ;;  %v1886_v39 = vunpack.i.h.bf16 %v1882_v51  ;;  %v1883_v42 = vunpack.i.l.bf16 %v1882_v51  ;;  %v1804_v55 = vunpack.i.h.bf16 %v3182_v40  ;;  %v1801_v52 = vunpack.i.l.bf16 %v3182_v40 }
 0x168   :  { %p2423_p5 = por %p2422_p4, %p2421_p3 }
 0x169   :  { %v1695_v4 = vpack.c.bf16 %v1886_v39, %v1774_v38  ;;  %v1663_v29 = vpack.c.bf16 %v1883_v42, %v1771_v60 }
 0x16a   :  { %v1887_v5 = vpop.trf.xlu1  ;;  %v3185_v1 = vpop.trf.xlu0  ;;  %p2424_p6 = pnand %p2423_p5, %p2417_p2 }
 0x16b   :  { %1534 = vst [vmem:[#allocation6 + $0x120] sm:$0xff] %v1695_v4  ;;  %1502 = vst [vmem:[#allocation6 + $0x20] sm:$0xff] %v1663_v29  ;;  %v1891_v54 = vunpack.i.h.bf16 %v1887_v5  ;;  %v1888_v7 = vunpack.i.l.bf16 %v1887_v5  ;;  %v1809_v56 = vunpack.i.h.bf16 %v3185_v1  ;;  %v1806_v18 = vunpack.i.l.bf16 %v3185_v1 }
 0x16d   :  { %v1697_v28 = vpack.c.bf16 %v1891_v54, %v1779_v41  ;;  %v1665_v57 = vpack.c.bf16 %v1888_v7, %v1776_v19 }
 0x16e   :  { %v1892_v46 = vpop.trf.xlu1  ;;  %v3189_v33 = vpop.trf.xlu0 }
 0x16f   :  { %1536 = vst [vmem:[#allocation6 + $0x130] sm:$0xff] %v1697_v28  ;;  %1504 = vst [vmem:[#allocation6 + $0x30] sm:$0xff] %v1665_v57  ;;  %v1896_v58 = vunpack.i.h.bf16 %v1892_v46  ;;  %v1893_v59 = vunpack.i.l.bf16 %v1892_v46  ;;  %v1814_v38 = vunpack.i.h.bf16 %v3189_v33  ;;  %v1811_v60 = vunpack.i.l.bf16 %v3189_v33 }
 0x171   :  { %v1699_v23 = vpack.c.bf16 %v1896_v58, %v1784_v50  ;;  %v1667_v20 = vpack.c.bf16 %v1893_v59, %v1781_v16 }
 0x172   :  { %v1897_v53 = vpop.trf.xlu1  ;;  %v3193_v37 = vpop.trf.xlu0 }
 0x173   :  { %1538 = vst [vmem:[#allocation6 + $0x140] sm:$0xff] %v1699_v23  ;;  %1506 = vst [vmem:[#allocation6 + $0x40] sm:$0xff] %v1667_v20  ;;  %v1901_v26 = vunpack.i.h.bf16 %v1897_v53  ;;  %v1898_v61 = vunpack.i.l.bf16 %v1897_v53  ;;  %v1819_v41 = vunpack.i.h.bf16 %v3193_v37  ;;  %v1816_v19 = vunpack.i.l.bf16 %v3193_v37 }
 0x175   :  { %v1701_v24 = vpack.c.bf16 %v1901_v26, %v1789_v17  ;;  %v1669_v34 = vpack.c.bf16 %v1898_v61, %v1786_v44 }
 0x176   :  { %v1902_v15 = vpop.trf.xlu1  ;;  %v3197_v21 = vpop.trf.xlu0 }
 0x177   :  { %1540 = vst [vmem:[#allocation6 + $0x150] sm:$0xff] %v1701_v24  ;;  %1508 = vst [vmem:[#allocation6 + $0x50] sm:$0xff] %v1669_v34  ;;  %v1906_v35 = vunpack.i.h.bf16 %v1902_v15  ;;  %v1903_v49 = vunpack.i.l.bf16 %v1902_v15  ;;  %v1824_v50 = vunpack.i.h.bf16 %v3197_v21  ;;  %v1821_v16 = vunpack.i.l.bf16 %v3197_v21 }
 0x179   :  { %v1703_v22 = vpack.c.bf16 %v1906_v35, %v1794_v36  ;;  %v1671_v2 = vpack.c.bf16 %v1903_v49, %v1791_v25 }
 0x17a   :  { %v1907_v31 = vpop.trf.xlu1  ;;  %v3201_v10 = vpop.trf.xlu0 }
 0x17b   :  { %1542 = vst [vmem:[#allocation6 + $0x160] sm:$0xff] %v1703_v22  ;;  %1510 = vst [vmem:[#allocation6 + $0x60] sm:$0xff] %v1671_v2  ;;  %v1911_v11 = vunpack.i.h.bf16 %v1907_v31  ;;  %v1908_v3 = vunpack.i.l.bf16 %v1907_v31  ;;  %v1829_v17 = vunpack.i.h.bf16 %v3201_v10  ;;  %v1826_v44 = vunpack.i.l.bf16 %v3201_v10 }
 0x17d   :  { %v1705_v8 = vpack.c.bf16 %v1911_v11, %v1799_v62  ;;  %v1673_v48 = vpack.c.bf16 %v1908_v3, %v1796_v43 }
 0x17e   :  { %v1912_v9 = vpop.trf.xlu1  ;;  %v3205_v14 = vpop.trf.xlu0 }
 0x17f   :  { %1544 = vst [vmem:[#allocation6 + $0x170] sm:$0xff] %v1705_v8  ;;  %1512 = vst [vmem:[#allocation6 + $0x70] sm:$0xff] %v1673_v48  ;;  %v1916_v27 = vunpack.i.h.bf16 %v1912_v9  ;;  %v1913_v30 = vunpack.i.l.bf16 %v1912_v9  ;;  %v1834_v36 = vunpack.i.h.bf16 %v3205_v14  ;;  %v1831_v25 = vunpack.i.l.bf16 %v3205_v14 }
 0x181   :  { %v1707_v63 = vpack.c.bf16 %v1916_v27, %v1804_v55  ;;  %v1675_v13 = vpack.c.bf16 %v1913_v30, %v1801_v52 }
 0x182   :  { %v1917_v32 = vpop.trf.xlu1  ;;  %v3209_v6 = vpop.trf.xlu0 }
 0x183   :  { %1546 = vst [vmem:[#allocation6 + $0x180] sm:$0xff] %v1707_v63  ;;  %1514 = vst [vmem:[#allocation6 + $0x80] sm:$0xff] %v1675_v13  ;;  %v1921_v12 = vunpack.i.h.bf16 %v1917_v32  ;;  %v1918_v47 = vunpack.i.l.bf16 %v1917_v32  ;;  %v1839_v62 = vunpack.i.h.bf16 %v3209_v6  ;;  %v1836_v43 = vunpack.i.l.bf16 %v3209_v6 }
 0x185   :  { %v1709_v0 = vpack.c.bf16 %v1921_v12, %v1809_v56  ;;  %v1677_v45 = vpack.c.bf16 %v1918_v47, %v1806_v18 }
 0x186   :  { %v1922_v51 = vpop.trf.xlu1  ;;  %v3213_v40 = vpop.trf.xlu0 }
 0x187   :  { %1548 = vst [vmem:[#allocation6 + $0x190] sm:$0xff] %v1709_v0  ;;  %1516 = vst [vmem:[#allocation6 + $0x90] sm:$0xff] %v1677_v45  ;;  %v1926_v39 = vunpack.i.h.bf16 %v1922_v51  ;;  %v1923_v42 = vunpack.i.l.bf16 %v1922_v51  ;;  %v1988_v55 = vunpack.i.h.bf16 %v3213_v40  ;;  %v1985_v52 = vunpack.i.l.bf16 %v3213_v40 }
 0x189   :  { %v1711_v4 = vpack.c.bf16 %v1926_v39, %v1814_v38  ;;  %v1679_v29 = vpack.c.bf16 %v1923_v42, %v1811_v60 }
 0x18a   :  { %v1927_v5 = vpop.trf.xlu1  ;;  %v3217_v1 = vpop.trf.xlu0 }
 0x18b   :  { %1550 = vst [vmem:[#allocation6 + $0x1a0] sm:$0xff] %v1711_v4  ;;  %1518 = vst [vmem:[#allocation6 + $0xa0] sm:$0xff] %v1679_v29  ;;  %v1931_v54 = vunpack.i.h.bf16 %v1927_v5  ;;  %v1928_v7 = vunpack.i.l.bf16 %v1927_v5  ;;  %v1993_v56 = vunpack.i.h.bf16 %v3217_v1  ;;  %v1990_v18 = vunpack.i.l.bf16 %v3217_v1 }
 0x18d   :  { %v1713_v28 = vpack.c.bf16 %v1931_v54, %v1819_v41  ;;  %v1681_v57 = vpack.c.bf16 %v1928_v7, %v1816_v19 }
 0x18e   :  { %v1932_v46 = vpop.trf.xlu1  ;;  %v3221_v33 = vpop.trf.xlu0 }
 0x18f   :  { %1552 = vst [vmem:[#allocation6 + $0x1b0] sm:$0xff] %v1713_v28  ;;  %1520 = vst [vmem:[#allocation6 + $0xb0] sm:$0xff] %v1681_v57  ;;  %v1936_v58 = vunpack.i.h.bf16 %v1932_v46  ;;  %v1933_v59 = vunpack.i.l.bf16 %v1932_v46  ;;  %v1998_v38 = vunpack.i.h.bf16 %v3221_v33  ;;  %v1995_v60 = vunpack.i.l.bf16 %v3221_v33 }
 0x191   :  { %v1715_v23 = vpack.c.bf16 %v1936_v58, %v1824_v50  ;;  %v1683_v20 = vpack.c.bf16 %v1933_v59, %v1821_v16 }
 0x192   :  { %v1937_v53 = vpop.trf.xlu1  ;;  %v3225_v37 = vpop.trf.xlu0 }
 0x193   :  { %1554 = vst [vmem:[#allocation6 + $0x1c0] sm:$0xff] %v1715_v23  ;;  %1522 = vst [vmem:[#allocation6 + $0xc0] sm:$0xff] %v1683_v20  ;;  %v1941_v26 = vunpack.i.h.bf16 %v1937_v53  ;;  %v1938_v61 = vunpack.i.l.bf16 %v1937_v53  ;;  %v2003_v41 = vunpack.i.h.bf16 %v3225_v37  ;;  %v2000_v19 = vunpack.i.l.bf16 %v3225_v37 }
 0x195   :  { %v1717_v24 = vpack.c.bf16 %v1941_v26, %v1829_v17  ;;  %v1685_v34 = vpack.c.bf16 %v1938_v61, %v1826_v44 }
 0x196   :  { %v1942_v15 = vpop.trf.xlu1  ;;  %v3229_v21 = vpop.trf.xlu0 }
 0x197   :  { %1556 = vst [vmem:[#allocation6 + $0x1d0] sm:$0xff] %v1717_v24  ;;  %1524 = vst [vmem:[#allocation6 + $0xd0] sm:$0xff] %v1685_v34  ;;  %v1946_v35 = vunpack.i.h.bf16 %v1942_v15  ;;  %v1943_v49 = vunpack.i.l.bf16 %v1942_v15  ;;  %v2008_v50 = vunpack.i.h.bf16 %v3229_v21  ;;  %v2005_v16 = vunpack.i.l.bf16 %v3229_v21 }
 0x199   :  { %v1719_v22 = vpack.c.bf16 %v1946_v35, %v1834_v36  ;;  %v1687_v2 = vpack.c.bf16 %v1943_v49, %v1831_v25 }
 0x19a   :  { %v1947_v31 = vpop.trf.xlu1  ;;  %v3233_v10 = vpop.trf.xlu0 }
 0x19b   :  { %1558 = vst [vmem:[#allocation6 + $0x1e0] sm:$0xff] %v1719_v22  ;;  %1526 = vst [vmem:[#allocation6 + $0xe0] sm:$0xff] %v1687_v2  ;;  %v1951_v11 = vunpack.i.h.bf16 %v1947_v31  ;;  %v1948_v3 = vunpack.i.l.bf16 %v1947_v31  ;;  %v2013_v17 = vunpack.i.h.bf16 %v3233_v10  ;;  %v2010_v44 = vunpack.i.l.bf16 %v3233_v10 }
 0x19d   :  { %v1721_v8 = vpack.c.bf16 %v1951_v11, %v1839_v62  ;;  %v1689_v48 = vpack.c.bf16 %v1948_v3, %v1836_v43 }
 0x19e   :  { %v2096_v9 = vpop.trf.xlu1  ;;  %v3237_v14 = vpop.trf.xlu0 }
 0x19f   :  { %1560 = vst [vmem:[#allocation6 + $0x1f0] sm:$0xff] %v1721_v8  ;;  %1528 = vst [vmem:[#allocation6 + $0xf0] sm:$0xff] %v1689_v48  ;;  %v2100_v27 = vunpack.i.h.bf16 %v2096_v9  ;;  %v2097_v30 = vunpack.i.l.bf16 %v2096_v9  ;;  %v2018_v36 = vunpack.i.h.bf16 %v3237_v14  ;;  %v2015_v25 = vunpack.i.l.bf16 %v3237_v14 }
 0x1a1   :  { %v1692_v63 = vpack.c.bf16 %v2100_v27, %v1988_v55  ;;  %v1660_v13 = vpack.c.bf16 %v2097_v30, %v1985_v52 }
 0x1a2   :  { %v2101_v32 = vpop.trf.xlu1  ;;  %v3241_v6 = vpop.trf.xlu0 }
 0x1a3   :  { %1531 = vst [vmem:[#allocation6 + $0x108] sm:$0xff] %v1692_v63  ;;  %1499 = vst [vmem:[#allocation6 + $0x8] sm:$0xff] %v1660_v13  ;;  %v2105_v12 = vunpack.i.h.bf16 %v2101_v32  ;;  %v2102_v47 = vunpack.i.l.bf16 %v2101_v32  ;;  %v2023_v62 = vunpack.i.h.bf16 %v3241_v6  ;;  %v2020_v43 = vunpack.i.l.bf16 %v3241_v6 }
 0x1a5   :  { %v1694_v0 = vpack.c.bf16 %v2105_v12, %v1993_v56  ;;  %v1662_v45 = vpack.c.bf16 %v2102_v47, %v1990_v18 }
 0x1a6   :  { %v2106_v51 = vpop.trf.xlu1  ;;  %v3245_v40 = vpop.trf.xlu0 }
 0x1a7   :  { %1533 = vst [vmem:[#allocation6 + $0x118] sm:$0xff] %v1694_v0  ;;  %1501 = vst [vmem:[#allocation6 + $0x18] sm:$0xff] %v1662_v45  ;;  %v2110_v39 = vunpack.i.h.bf16 %v2106_v51  ;;  %v2107_v42 = vunpack.i.l.bf16 %v2106_v51  ;;  %v2028_v55 = vunpack.i.h.bf16 %v3245_v40  ;;  %v2025_v52 = vunpack.i.l.bf16 %v3245_v40 }
 0x1a9   :  { %v1696_v4 = vpack.c.bf16 %v2110_v39, %v1998_v38  ;;  %v1664_v29 = vpack.c.bf16 %v2107_v42, %v1995_v60 }
 0x1aa   :  { %v2111_v5 = vpop.trf.xlu1  ;;  %v3249_v1 = vpop.trf.xlu0 }
 0x1ab   :  { %1535 = vst [vmem:[#allocation6 + $0x128] sm:$0xff] %v1696_v4  ;;  %1503 = vst [vmem:[#allocation6 + $0x28] sm:$0xff] %v1664_v29  ;;  %v2115_v54 = vunpack.i.h.bf16 %v2111_v5  ;;  %v2112_v7 = vunpack.i.l.bf16 %v2111_v5  ;;  %v2033_v56 = vunpack.i.h.bf16 %v3249_v1  ;;  %v2030_v18 = vunpack.i.l.bf16 %v3249_v1 }
 0x1ad   :  { %v1698_v28 = vpack.c.bf16 %v2115_v54, %v2003_v41  ;;  %v1666_v57 = vpack.c.bf16 %v2112_v7, %v2000_v19 }
 0x1ae   :  { %v2116_v46 = vpop.trf.xlu1  ;;  %v2034_v33 = vpop.trf.xlu0 }
 0x1af   :  { %1537 = vst [vmem:[#allocation6 + $0x138] sm:$0xff] %v1698_v28  ;;  %1505 = vst [vmem:[#allocation6 + $0x38] sm:$0xff] %v1666_v57  ;;  %v2120_v58 = vunpack.i.h.bf16 %v2116_v46  ;;  %v2117_v59 = vunpack.i.l.bf16 %v2116_v46  ;;  %v2038_v38 = vunpack.i.h.bf16 %v2034_v33  ;;  %v2035_v60 = vunpack.i.l.bf16 %v2034_v33 }
 0x1b1   :  { %v1700_v23 = vpack.c.bf16 %v2120_v58, %v2008_v50  ;;  %v1668_v20 = vpack.c.bf16 %v2117_v59, %v2005_v16 }
 0x1b2   :  { %v2121_v53 = vpop.trf.xlu1  ;;  %v2039_v37 = vpop.trf.xlu0 }
 0x1b3   :  { %1539 = vst [vmem:[#allocation6 + $0x148] sm:$0xff] %v1700_v23  ;;  %1507 = vst [vmem:[#allocation6 + $0x48] sm:$0xff] %v1668_v20  ;;  %v2125_v26 = vunpack.i.h.bf16 %v2121_v53  ;;  %v2122_v61 = vunpack.i.l.bf16 %v2121_v53  ;;  %v2043_v4 = vunpack.i.h.bf16 %v2039_v37  ;;  %v2040_v29 = vunpack.i.l.bf16 %v2039_v37 }
 0x1b5   :  { %v1702_v24 = vpack.c.bf16 %v2125_v26, %v2013_v17  ;;  %v1670_v34 = vpack.c.bf16 %v2122_v61, %v2010_v44 }
 0x1b6   :  { %v2126_v15 = vpop.trf.xlu1  ;;  %v2044_v21 = vpop.trf.xlu0 }
 0x1b7   :  { %1541 = vst [vmem:[#allocation6 + $0x158] sm:$0xff] %v1702_v24  ;;  %1509 = vst [vmem:[#allocation6 + $0x58] sm:$0xff] %v1670_v34  ;;  %v2130_v35 = vunpack.i.h.bf16 %v2126_v15  ;;  %v2127_v49 = vunpack.i.l.bf16 %v2126_v15  ;;  %v2048_v1 = vunpack.i.h.bf16 %v2044_v21  ;;  %v2045_v28 = vunpack.i.l.bf16 %v2044_v21 }
 0x1b9   :  { %v1704_v22 = vpack.c.bf16 %v2130_v35, %v2018_v36  ;;  %v1672_v2 = vpack.c.bf16 %v2127_v49, %v2015_v25 }
 0x1ba   :  { %v2131_v31 = vpop.trf.xlu1  ;;  %v2049_v10 = vpop.trf.xlu0 }
 0x1bb   :  { %1543 = vst [vmem:[#allocation6 + $0x168] sm:$0xff] %v1704_v22  ;;  %1511 = vst [vmem:[#allocation6 + $0x68] sm:$0xff] %v1672_v2  ;;  %v2135_v11 = vunpack.i.h.bf16 %v2131_v31  ;;  %v2132_v3 = vunpack.i.l.bf16 %v2131_v31  ;;  %v2053_v17 = vunpack.i.h.bf16 %v2049_v10  ;;  %v2050_v33 = vunpack.i.l.bf16 %v2049_v10 }
 0x1bd   :  { %v1706_v8 = vpack.c.bf16 %v2135_v11, %v2023_v62  ;;  %v1674_v48 = vpack.c.bf16 %v2132_v3, %v2020_v43 }
 0x1be   :  { %v2136_v9 = vpop.trf.xlu1  ;;  %v2054_v14 = vpop.trf.xlu0 }
 0x1bf   :  { %1545 = vst [vmem:[#allocation6 + $0x178] sm:$0xff] %v1706_v8  ;;  %1513 = vst [vmem:[#allocation6 + $0x78] sm:$0xff] %v1674_v48  ;;  %v2140_v27 = vunpack.i.h.bf16 %v2136_v9  ;;  %v2137_v30 = vunpack.i.l.bf16 %v2136_v9  ;;  %v2058_v61 = vunpack.i.h.bf16 %v2054_v14  ;;  %v2055_v36 = vunpack.i.l.bf16 %v2054_v14 }
 0x1c1   :  { %v1708_v63 = vpack.c.bf16 %v2140_v27, %v2028_v55  ;;  %v1676_v13 = vpack.c.bf16 %v2137_v30, %v2025_v52 }
 0x1c2   :  { %v2141_v32 = vpop.trf.xlu1  ;;  %v2059_v6 = vpop.trf.xlu0 }
 0x1c3   :  { %1547 = vst [vmem:[#allocation6 + $0x188] sm:$0xff] %v1708_v63  ;;  %1515 = vst [vmem:[#allocation6 + $0x88] sm:$0xff] %v1676_v13  ;;  %v2145_v12 = vunpack.i.h.bf16 %v2141_v32  ;;  %v2142_v47 = vunpack.i.l.bf16 %v2141_v32  ;;  %v2063_v35 = vunpack.i.h.bf16 %v2059_v6  ;;  %v2060_v49 = vunpack.i.l.bf16 %v2059_v6 }
 0x1c5   :  { %v1710_v0 = vpack.c.bf16 %v2145_v12, %v2033_v56  ;;  %v1678_v45 = vpack.c.bf16 %v2142_v47, %v2030_v18 }
 0x1c6   :  { %v2146_v51 = vpop.trf.xlu1 }
 0x1c7   :  { %1549 = vst [vmem:[#allocation6 + $0x198] sm:$0xff] %v1710_v0  ;;  %1517 = vst [vmem:[#allocation6 + $0x98] sm:$0xff] %v1678_v45  ;;  %v2150_v39 = vunpack.i.h.bf16 %v2146_v51  ;;  %v2147_v42 = vunpack.i.l.bf16 %v2146_v51 }
 0x1c9   :  { %v1712_v41 = vpack.c.bf16 %v2150_v39, %v2038_v38  ;;  %v1680_v40 = vpack.c.bf16 %v2147_v42, %v2035_v60 }
 0x1ca   :  { %v2151_v19 = vpop.trf.xlu1 }
 0x1cb   :  { %1551 = vst [vmem:[#allocation6 + $0x1a8] sm:$0xff] %v1712_v41  ;;  %1519 = vst [vmem:[#allocation6 + $0xa8] sm:$0xff] %v1680_v40  ;;  %v2155_v5 = vunpack.i.h.bf16 %v2151_v19  ;;  %v2152_v54 = vunpack.i.l.bf16 %v2151_v19 }
 0x1cd   :  { %v1714_v7 = vpack.c.bf16 %v2155_v5, %v2043_v4  ;;  %v1682_v50 = vpack.c.bf16 %v2152_v54, %v2040_v29 }
 0x1ce   :  { %v2156_v57 = vpop.trf.xlu1 }
 0x1cf   :  { %1553 = vst [vmem:[#allocation6 + $0x1b8] sm:$0xff] %v1714_v7  ;;  %1521 = vst [vmem:[#allocation6 + $0xb8] sm:$0xff] %v1682_v50  ;;  %v2160_v16 = vunpack.i.h.bf16 %v2156_v57  ;;  %v2157_v46 = vunpack.i.l.bf16 %v2156_v57 }
 0x1d1   :  { %v1716_v58 = vpack.c.bf16 %v2160_v16, %v2048_v1  ;;  %v1684_v59 = vpack.c.bf16 %v2157_v46, %v2045_v28 }
 0x1d2   :  { %v2161_v23 = vpop.trf.xlu1 }
 0x1d3   :  { %1555 = vst [vmem:[#allocation6 + $0x1c8] sm:$0xff] %v1716_v58  ;;  %1523 = vst [vmem:[#allocation6 + $0xc8] sm:$0xff] %v1684_v59  ;;  %v2165_v20 = vunpack.i.h.bf16 %v2161_v23  ;;  %v2162_v44 = vunpack.i.l.bf16 %v2161_v23 }
 0x1d5   :  { %v1718_v53 = vpack.c.bf16 %v2165_v20, %v2053_v17  ;;  %v1686_v26 = vpack.c.bf16 %v2162_v44, %v2050_v33 }
 0x1d6   :  { %v2166_v37 = vpop.trf.xlu1 }
 0x1d7   :  { %1557 = vst [vmem:[#allocation6 + $0x1d8] sm:$0xff] %v1718_v53  ;;  %1525 = vst [vmem:[#allocation6 + $0xd8] sm:$0xff] %v1686_v26  ;;  %v2170_v24 = vunpack.i.h.bf16 %v2166_v37  ;;  %v2167_v34 = vunpack.i.l.bf16 %v2166_v37 }
 0x1d9   :  { %v1720_v25 = vpack.c.bf16 %v2170_v24, %v2058_v61  ;;  %v1688_v15 = vpack.c.bf16 %v2167_v34, %v2055_v36 }
 0x1da   :  { %v2171_v62 = vpop.trf.xlu1 }
 0x1db   :  { %1559 = vst [vmem:[#allocation6 + $0x1e8] sm:$0xff] %v1720_v25  ;;  %1527 = vst [vmem:[#allocation6 + $0xe8] sm:$0xff] %v1688_v15  ;;  %v2175_v21 = vunpack.i.h.bf16 %v2171_v62  ;;  %v2172_v22 = vunpack.i.l.bf16 %v2171_v62 }
 0x1dd   :  { %v1722_v2 = vpack.c.bf16 %v2175_v21, %v2063_v35  ;;  %v1690_v43 = vpack.c.bf16 %v2172_v22, %v2060_v49 }
 0x1df   :  { %1561 = vst [vmem:[#allocation6 + $0x1f8] sm:$0xff] %v1722_v2  ;;  %1529 = vst [vmem:[#allocation6 + $0xf8] sm:$0xff] %v1690_v43 }
 0x1e0   :  { %2427 = shalt.err (!%p2424_p6)
}
 0x1e1   :  { %s2428_s10 = scalar_lea.hbm %s3279_s2, 8192 }
 0x1e2   :  { %p2429_p7 = scmp.ne.s32.totalorder %s3279_s2, %s2428_s10  ;;  %p2432_p8 = scmp.lt.u32.totalorder %s2428_s10, %s3279_s2 }
 0x1e4   :  { %p2434_p9 = pnand %p2432_p8, %p2429_p7 }
 0x1e6   :  { %2437 = shalt.err (!%p2434_p9)
}
 0x1e7   :  { %1585 = dma.vmem_to_hbm [thread:$0]  %s1580_s6, 8192, %s3279_s2, [#allocation7], %s2445_s19, %s2445_s19, %s2446_s20  }
 0x1e8   :  { %2440 = dma.done.wait [#allocation4], 16384  }
 0x1e9   :  { %2441 = vsyncadd [#allocation4], 4294950912 }
 0x1ea   :  { %2442 = dma.done.wait [#allocation7], 8192  }
 0x1eb   :  { %2443 = vsyncadd [#allocation7], 4294959104 }
 0x1ec   :  { %1592 = vsyncpa [#allocation3], 1 }
 0x1ed   :  { %1593 = vsyncpa [#allocation4], 1 }
 0x1ee   :  { %1594 = vsyncpa [#allocation7], 1 }

</bundles_post_ra>
